<compile_context>
chip_gen: v7x
topology: tpu7x:2x2x1
jax: 0.10.0
libtpu: 0.0.40
codegen_flags: <defaults>
</compile_context>

<pallas_src>
import functools
import math

import jax
import jax.numpy as jnp
import numpy as np
from jax.experimental import pallas as pl
from jax.experimental.pallas import tpu as pltpu


# ----------------------------- tile selection helpers --------------------------------


def _pick_tile(n, target, quantum=8):
    """Largest multiple-of-`quantum` divisor of n that is <= target (or n itself)."""
    if n <= target:
        return n
    t = (min(target, n) // quantum) * quantum
    while t >= quantum:
        if n % t == 0:
            return t
        t -= quantum
    return n


def _token_tile(S, target=512):
    # Prefer >= 2 token tiles so megacore ("parallel") can shard work across both TCs.
    if S // target < 2:
        target = max(S // 2, 8)
    return _pick_tile(S, target, quantum=8)


def _ec_tile(ec_total, target=4096):
    # Lane-dense tile over the E*C output axis; bounds pass-2 VMEM (v7x: 64 MiB).
    if ec_total <= target:
        return ec_total
    return _pick_tile(ec_total, target, quantum=128)


# ----------------------------- pass 1: gating ---------------------------------------


def _gate_kernel(x_ref, w_ref, gumbel_ref, tok_ref, stat_ref):
    """Per-tile gating: logits -> softmax -> top-1 / sampled top-2 + tile stats."""
    TS = x_ref.shape[0]
    E = w_ref.shape[1]

    # Operands stay in their input dtype (use_fp32=False path); f32 accumulation on MXU.
    logits = jnp.dot(x_ref[...], w_ref[...], preferred_element_type=jnp.float32)  # (TS,E)

    mx = jnp.max(logits, axis=1, keepdims=True)
    ex = jnp.exp(logits - mx)
    gates = ex / jnp.sum(ex, axis=1, keepdims=True)                               # (TS,E)

    iota_e = jax.lax.broadcasted_iota(jnp.int32, (TS, E), 1)

    # top-1 expert (first-index tie-break)
    max1 = jnp.max(gates, axis=1, keepdims=True)
    idx1 = jnp.min(jnp.where(gates == max1, iota_e, E), axis=1, keepdims=True)
    mask1 = iota_e == idx1

    # second expert: argmax of (logits + gumbel) with the top-1 slot masked to -inf
    lwn = logits + gumbel_ref[...].astype(jnp.float32)
    le1 = jnp.where(mask1, -jnp.inf, lwn)
    max2 = jnp.max(le1, axis=1, keepdims=True)
    idx2 = jnp.min(jnp.where(le1 == max2, iota_e, E), axis=1, keepdims=True)
    mask2 = iota_e == idx2

    g1 = max1                                                      # gates at top-1 expert
    g2 = jnp.sum(jnp.where(mask2, gates, 0.0), axis=1, keepdims=True)

    # per-tile, per-expert statistics (tiny)
    counts1 = jnp.sum(mask1.astype(jnp.float32), axis=0, keepdims=True)   # (1,E)
    counts2 = jnp.sum(mask2.astype(jnp.float32), axis=0, keepdims=True)
    gsum = jnp.sum(gates, axis=0, keepdims=True)                          # for l_aux (me)
    eps = jnp.float32(jnp.finfo(jnp.float32).eps)
    plsum = jnp.sum(gates * jnp.log(jnp.clip(gates, eps, 1.0 - eps)),
                    axis=0, keepdims=True)                                # entropy metric

    # compact per-token record [idx1, idx2, gate1, gate2] (narrow store, tiny bytes)
    col4 = jax.lax.broadcasted_iota(jnp.int32, (TS, 4), 1)
    tok_ref[...] = jnp.where(col4 == 0, idx1.astype(jnp.float32),
                     jnp.where(col4 == 1, idx2.astype(jnp.float32),
                       jnp.where(col4 == 2, g1, g2)))

    row4 = jax.lax.broadcasted_iota(jnp.int32, (4, E), 0)
    stat = jnp.where(row4 == 0, counts1,
             jnp.where(row4 == 1, counts2,
               jnp.where(row4 == 2, gsum, plsum)))
    stat_ref[...] = stat[None, :, :]                                      # (1,4,E)


# ----------------------------- pass 2: routing / combine -----------------------------


def _route_kernel(tok_ref, off_ref, tril_ref, iota_ref, cw_ref, disp_ref,
                  j_sc, v_sc, *, num_experts: int, capacity: int):
    """(token_tile, ec_tile) grid: routing once per token tile, slab write per ec tile."""
    E = num_experts
    C = capacity
    TS = tok_ref.shape[0]
    t = pl.program_id(0)
    ec = pl.program_id(1)

    # Per-token routing is computed once per token tile (ec axis is "arbitrary" so the
    # VMEM scratch carry is valid) and reused for every ec slab slice.
    @pl.when(ec == 0)
    def _():
        tok = tok_ref[...]                                   # (TS,4) f32
        idx1 = tok[:, 0:1].astype(jnp.int32)
        idx2 = tok[:, 1:2].astype(jnp.int32)
        g1 = tok[:, 2:3]
        g2 = tok[:, 3:4]

        # fused one-hot masks: lanes [0,E) = mask1, lanes [E,2E) = mask2
        iota2e = jax.lax.broadcasted_iota(jnp.int32, (TS, 2 * E), 1)
        masks = jnp.logical_or(iota2e == idx1, iota2e == idx2 + E).astype(jnp.float32)

        # fused intra-tile inclusive cumsum via one (TS,TS) tril matmul (tril is a
        # resident constant input -- not regenerated every grid step)
        csum = jnp.dot(tril_ref[...], masks, preferred_element_type=jnp.float32)  # (TS,2E)

        off = off_ref[pl.ds(t, 1), :]                        # (1,2E) carried offsets
        loc = csum - 1.0 + off                               # global locations (1 & 2)

        maskd = masks * (loc < jnp.float32(C)).astype(jnp.float32)   # drop over capacity

        in_first = iota2e < E
        gsel = jnp.where(in_first, g1, g2) * maskd
        g1s = jnp.sum(jnp.where(in_first, gsel, 0.0), axis=1, keepdims=True)
        g2s = jnp.sum(gsel, axis=1, keepdims=True) - g1s
        denom = jnp.maximum(g1s + g2s, jnp.float32(jnp.finfo(jnp.float32).eps))
        v1 = g1s / denom
        v2 = g2s / denom

        lsel = loc * maskd
        loc1_s = jnp.sum(jnp.where(in_first, lsel, 0.0), axis=1, keepdims=True)
        loc2_s = jnp.sum(lsel, axis=1, keepdims=True) - loc1_s

        j1 = idx1 * C + loc1_s.astype(jnp.int32)             # flat combine column index
        j2 = idx2 * C + loc2_s.astype(jnp.int32)
        j_sc[...] = jnp.concatenate([j1, j2], axis=1)        # (TS,2) int32
        v_sc[...] = jnp.concatenate([v1, v2], axis=1)        # (TS,2) f32

    j = j_sc[...]
    v = v_sc[...]
    j1 = j[:, 0:1]
    j2 = j[:, 1:2]
    v1 = v[:, 0:1]
    v2 = v[:, 1:2]

    # Lane-dense combine slab slice: cols is a resident constant global-column iota for
    # this ec block.  j1 != j2 always, so a single nested where suffices (fewer VALU ops).
    cols = iota_ref[...]                                     # (1, EC_TILE) int32
    vals = jnp.where(cols == j1, v1, jnp.where(cols == j2, v2, 0.0))
    cw_ref[...] = vals.astype(cw_ref.dtype)
    disp_ref[...] = (vals != 0.0).astype(jnp.int8)           # dispatch_mask == (cw != 0)


# ----------------------------- wrapper ----------------------------------------------


def _metadata_from_stats(counts1_tot, counts2_tot, plsum_tot, S, E, C):
    tiny = jnp.finfo(jnp.float32).tiny
    md = {}
    md["entropy_gating"] = -jnp.sum(plsum_tot) / S
    md["median_prefix_count_expert1"] = 0   # TODO(synk): prefix_tokens path not implemented
    over1 = jnp.sum(jnp.maximum(counts1_tot - C, 0.0))
    over2 = jnp.sum(jnp.maximum(counts2_tot - jnp.maximum(C - counts1_tot, 0.0), 0.0))
    md["overflow_expert1"] = 100.0 * over1 / jnp.sum(counts1_tot)
    md["overflow_expert2"] = 100.0 * over2 / jnp.sum(counts2_tot)
    sample_count = max(math.ceil(E * 0.2), 1)
    for name, cnt in (("expert1", counts1_tot), ("expert2", counts2_tot)):
        hist = 100.0 * cnt / S
        md[f"unused_{name}_count"] = jnp.sum(hist == 0)
        hist = jnp.sort(hist)[::-1] + tiny
        md[f"{name}_balance_top"] = jnp.sum(hist[:sample_count])
        md[f"{name}_balance_bottom"] = jnp.sum(hist[-sample_count:])
    return md


def top2gate_forward(x, wg_weight, gumbel_noise, *, tile_tokens=512, ec_tile_target=4096):
    """x: (S, M), wg_weight: (E, M) (torch Linear layout), gumbel_noise: (S, E).

    Inputs may be f32 or bf16; they are NOT upcast (use_fp32=False).  combine_weights is
    returned in x.dtype, dispatch_mask as bool.
    """
    S, M = x.shape
    E = wg_weight.shape[0]
    assert E >= 2, "top-2 gating needs at least 2 experts"
    C = 2 * math.ceil(S / E)                         # training-mode capacity
    assert S < (1 << 24) and E * C < (1 << 31), "f32-carried indices would lose precision"

    TS = _token_tile(S, tile_tokens)                 # shared token tile (gate & route)
    T = S // TS
    EC = E * C
    EC_T = _ec_tile(EC, ec_tile_target)
    NEC = EC // EC_T
    w = wg_weight.T                                  # (M, E), stays in input dtype

    vmem_limit = 48 * 1024 * 1024                    # headroom under v7x's 64 MiB VMEM
    params1 = pltpu.CompilerParams(dimension_semantics=("parallel",),
                                   vmem_limit_bytes=vmem_limit)
    # ec axis must be "arbitrary": the route kernel carries per-token scratch across it.
    params2 = pltpu.CompilerParams(dimension_semantics=("parallel", "arbitrary"),
                                   vmem_limit_bytes=vmem_limit)

    # ---- pass 1: gating ----
    tok1, stats = pl.pallas_call(
        _gate_kernel,
        grid=(T,),
        in_specs=[
            pl.BlockSpec((TS, M), lambda t: (t, 0)),
            pl.BlockSpec((M, E), lambda t: (0, 0)),
            pl.BlockSpec((TS, E), lambda t: (t, 0)),
        ],
        out_specs=(
            pl.BlockSpec((TS, 4), lambda t: (t, 0)),
            pl.BlockSpec((1, 4, E), lambda t: (t, 0, 0)),
        ),
        out_shape=(
            jax.ShapeDtypeStruct((S, 4), jnp.float32),       # [idx1, idx2, g1, g2]
            jax.ShapeDtypeStruct((T, 4, E), jnp.float32),    # [cnt1, cnt2, gsum, plogp]
        ),
        compiler_params=params1,
    )(x, w, gumbel_noise)

    # ---- tiny cross-tile glue (O(T*E)) ----
    counts1_t = stats[:, 0, :]                       # (T, E)
    counts2_t = stats[:, 1, :]
    gsum_tot = jnp.sum(stats[:, 2, :], axis=0)       # (E,)
    plsum_tot = jnp.sum(stats[:, 3, :], axis=0)
    counts1_tot = jnp.sum(counts1_t, axis=0)
    counts2_tot = jnp.sum(counts2_t, axis=0)

    off1 = jnp.cumsum(counts1_t, axis=0) - counts1_t                         # exclusive prefix
    off2 = jnp.cumsum(counts2_t, axis=0) - counts2_t + counts1_tot[None, :]  # + global sum(mask1)
    off_flat = jnp.concatenate([off1, off2], axis=1)                         # (T, 2E) f32

    # auxiliary load-balancing loss
    me = gsum_tot / S
    ce = counts1_tot / S
    l_aux = jnp.mean(me * ce) * (E * E)

    metadata = _metadata_from_stats(counts1_tot, counts2_tot, plsum_tot, S, E, C)

    # resident constants for pass 2 (hoisted out of the per-step kernel body)
    tril = jnp.tril(jnp.ones((TS, TS), jnp.float32))
    iota_cols = jnp.arange(EC, dtype=jnp.int32)[None, :]                     # (1, E*C)

    # ---- pass 2: routing / combine / dispatch ----
    route_kernel = functools.partial(_route_kernel, num_experts=E, capacity=C)
    cw_flat, disp_flat = pl.pallas_call(
        route_kernel,
        grid=(T, NEC),
        in_specs=[
            pl.BlockSpec((TS, 4), lambda t, ec: (t, 0)),
            pl.BlockSpec((T, 2 * E), lambda t, ec: (0, 0)),      # resident offsets
            pl.BlockSpec((TS, TS), lambda t, ec: (0, 0)),        # resident tril
            pl.BlockSpec((1, EC_T), lambda t, ec: (0, ec)),      # resident column iota
        ],
        out_specs=(
            pl.BlockSpec((TS, EC_T), lambda t, ec: (t, ec)),     # lane-dense combine slab
            pl.BlockSpec((TS, EC_T), lambda t, ec: (t, ec)),     # lane-dense dispatch slab
        ),
        out_shape=(
            jax.ShapeDtypeStruct((S, EC), x.dtype),              # combine in input dtype
            jax.ShapeDtypeStruct((S, EC), jnp.int8),
        ),
        scratch_shapes=[
            pltpu.VMEM((TS, 2), jnp.int32),                      # [j1, j2]
            pltpu.VMEM((TS, 2), jnp.float32),                    # [v1, v2]
        ],
        compiler_params=params2,
    )(tok1, off_flat, tril, iota_cols)

    combine_weights = cw_flat.reshape(S, E, C)                   # free (split) reshape
    dispatch_mask = disp_flat.reshape(S, E, C).astype(jnp.bool_)

    return l_aux, combine_weights, dispatch_mask, metadata


# ----------------------------- pure-JAX reference ------------------------------------


def _reference(x, wg_weight, gumbel, capacity):
    """Pure-JAX reference of the same (default-arg) top2gating path."""
    logits = jnp.dot(x, wg_weight.T, precision=jax.lax.Precision.HIGHEST)
    gates = jax.nn.softmax(logits, axis=1)
    E = gates.shape[1]
    eps = jnp.finfo(jnp.float32).eps
    entropy_ref = jnp.mean(-jnp.sum(gates * jnp.log(jnp.clip(gates, eps, 1.0 - eps)), axis=-1))
    mask1 = jax.nn.one_hot(jnp.argmax(gates, axis=1), E, dtype=jnp.float32)
    le1 = jnp.where(mask1 > 0, -jnp.inf, logits + gumbel)
    mask2 = jax.nn.one_hot(jnp.argmax(le1, axis=1), E, dtype=jnp.float32)
    loc1 = jnp.cumsum(mask1, axis=0) - 1
    loc2 = jnp.cumsum(mask2, axis=0) - 1 + jnp.sum(mask1, axis=0, keepdims=True)
    l_aux = jnp.mean(gates.mean(0) * mask1.mean(0)) * E * E
    mask1d = mask1 * (loc1 < capacity)
    mask2d = mask2 * (loc2 < capacity)
    g1 = (gates * mask1d).sum(1)
    g2 = (gates * mask2d).sum(1)
    den = jnp.maximum(g1 + g2, eps)
    g1, g2 = g1 / den, g2 / den
    sc1 = jax.nn.one_hot((loc1 * mask1d).sum(1).astype(jnp.int32), capacity, dtype=jnp.float32)
    sc2 = jax.nn.one_hot((loc2 * mask2d).sum(1).astype(jnp.int32), capacity, dtype=jnp.float32)
    cw = ((g1[:, None] * mask1d)[:, :, None] * sc1[:, None, :]
          + (g2[:, None] * mask2d)[:, :, None] * sc2[:, None, :])
    return l_aux, cw, entropy_ref


if __name__ == "__main__":
    S, M, E = 256, 64, 8            # num_tokens, model_dim, num_experts
    key = jax.random.PRNGKey(0)
    kx, kw, kg = jax.random.split(key, 3)

    x = jax.random.normal(kx, (S, M), jnp.float32)
    bound = 1.0 / math.sqrt(M)      # deterministic stand-in for torch Linear init, shape (E, M)
    wg_weight = jax.random.uniform(kw, (E, M), jnp.float32, minval=-bound, maxval=bound)
    gumbel = jax.random.gumbel(kg, (S, E), jnp.float32)

    l_aux, combine_weights, dispatch_mask, metadata = top2gate_forward(x, wg_weight, gumbel)
    jax.block_until_ready(combine_weights)

    capacity = 2 * math.ceil(S / E)
    l_aux_ref, cw_ref, ent_ref = _reference(x, wg_weight, gumbel, capacity)
    np.testing.assert_allclose(np.asarray(l_aux), np.asarray(l_aux_ref), rtol=1e-4, atol=1e-6)
    np.testing.assert_allclose(np.asarray(combine_weights), np.asarray(cw_ref),
                               rtol=1e-4, atol=1e-5)
    np.testing.assert_array_equal(np.asarray(dispatch_mask), np.asarray(cw_ref) != 0)
    np.testing.assert_allclose(np.asarray(metadata["entropy_gating"]), np.asarray(ent_ref),
                               rtol=1e-4, atol=1e-5)
    assert dispatch_mask.shape == (S, E, capacity) and dispatch_mask.dtype == jnp.bool_
    assert combine_weights.dtype == x.dtype
    assert float(metadata["entropy_gating"]) > 0.0

    # bf16 passthrough smoke run (use_fp32=False keeps the input dtype end-to-end;
    # combine_weights comes back in bf16, halving the HBM read of x and the slab write).
    xb = x.astype(jnp.bfloat16)
    wb = wg_weight.astype(jnp.bfloat16)
    gb = gumbel.astype(jnp.bfloat16)
    l_aux_b, cw_b, dm_b, md_b = top2gate_forward(xb, wb, gb)
    jax.block_until_ready(cw_b)
    assert cw_b.dtype == jnp.bfloat16 and cw_b.shape == (S, E, capacity)
    assert dm_b.shape == (S, E, capacity) and dm_b.dtype == jnp.bool_
    assert bool(jnp.all(jnp.isfinite(cw_b.astype(jnp.float32))))

    print("KERNEL_OK")
</pallas_src>

<mosaic_0001>
module attributes {stable_mosaic.version = 11 : i64} {
  func.func @_gate_kernel(%arg0: i32, %arg1: memref<128x64xf32, #tpu.memory_space<vmem>>, %arg2: memref<64x8xf32, #tpu.memory_space<vmem>>, %arg3: memref<128x8xf32, #tpu.memory_space<vmem>>, %arg4: memref<128x4xf32, #tpu.memory_space<vmem>>, %arg5: memref<1x4x8xf32, #tpu.memory_space<vmem>>) attributes {dimension_semantics = [#tpu.dimension_semantics<parallel>], iteration_bounds = array<i64: 2>, scalar_prefetch = 0 : i64, scratch_operands = 0 : i64, tpu.core_type = #tpu.core_type<tc>, window_params = [{transform_indices = @transform_0, window_bounds = array<i64: 128, 64>}, {pipeline_mode = #tpu.pipeline_mode<synchronous>, transform_indices = @transform_1, window_bounds = array<i64: 64, 8>}, {transform_indices = @transform_2, window_bounds = array<i64: 128, 8>}, {transform_indices = @transform_3, window_bounds = array<i64: 128, 4>}, {transform_indices = @transform_4, window_bounds = array<i64: 1, 4, 8>}]} {
    %c0 = arith.constant 0 : index
    %c0_0 = arith.constant 0 : index
    %0 = vector.load %arg1[%c0, %c0_0] : memref<128x64xf32, #tpu.memory_space<vmem>>, vector<128x64xf32>
    %c0_1 = arith.constant 0 : index
    %c0_2 = arith.constant 0 : index
    %1 = vector.load %arg2[%c0_1, %c0_2] : memref<64x8xf32, #tpu.memory_space<vmem>>, vector<64x8xf32>
    %cst = arith.constant dense<0.000000e+00> : vector<128x8xf32>
    %2 = tpu.matmul %0, %1, %cst {dimension_numbers = #tpu.dot_dimension_numbers<[1], [0], [0], [1], [0, 0, 1, 1], [], []>} : vector<128x64xf32>, vector<64x8xf32>, vector<128x8xf32> -> vector<128x8xf32>
    %cst_3 = arith.constant dense<0xFF800000> : vector<128xf32>
    %3 = vector.multi_reduction <maximumf>, %2, %cst_3 [1] : vector<128x8xf32> to vector<128xf32>
    %4 = vector.shape_cast %3 : vector<128xf32> to vector<128x1xf32>
    %5 = vector.broadcast %4 : vector<128x1xf32> to vector<128x8xf32>
    %6 = arith.subf %2, %5 : vector<128x8xf32>
    %7 = math.exp %6 : vector<128x8xf32>
    %cst_4 = arith.constant dense<0.000000e+00> : vector<128xf32>
    %8 = vector.multi_reduction <add>, %7, %cst_4 [1] : vector<128x8xf32> to vector<128xf32>
    %9 = vector.shape_cast %8 : vector<128xf32> to vector<128x1xf32>
    %10 = vector.broadcast %9 : vector<128x1xf32> to vector<128x8xf32>
    %11 = arith.divf %7, %10 : vector<128x8xf32>
    %12 = tpu.iota {dimensions = array<i32: 1>} : vector<128x8xi32>
    %cst_5 = arith.constant dense<0xFF800000> : vector<128xf32>
    %13 = vector.multi_reduction <maximumf>, %11, %cst_5 [1] : vector<128x8xf32> to vector<128xf32>
    %14 = vector.shape_cast %13 : vector<128xf32> to vector<128x1xf32>
    %15 = vector.broadcast %14 : vector<128x1xf32> to vector<128x8xf32>
    %16 = arith.cmpf oeq, %11, %15 : vector<128x8xf32>
    %c8_i32 = arith.constant 8 : i32
    %17 = vector.broadcast %c8_i32 : i32 to vector<128x8xi32>
    %18 = arith.select %16, %12, %17 : vector<128x8xi1>, vector<128x8xi32>
    %cst_6 = arith.constant dense<2147483647> : vector<128xi32>
    %19 = vector.multi_reduction <minsi>, %18, %cst_6 [1] : vector<128x8xi32> to vector<128xi32>
    %20 = vector.shape_cast %19 : vector<128xi32> to vector<128x1xi32>
    %21 = vector.broadcast %20 : vector<128x1xi32> to vector<128x8xi32>
    %22 = arith.cmpi eq, %12, %21 : vector<128x8xi32>
    %c0_7 = arith.constant 0 : index
    %c0_8 = arith.constant 0 : index
    %23 = vector.load %arg3[%c0_7, %c0_8] : memref<128x8xf32, #tpu.memory_space<vmem>>, vector<128x8xf32>
    %24 = arith.addf %2, %23 : vector<128x8xf32>
    %cst_9 = arith.constant 0xFF800000 : f32
    %25 = vector.broadcast %cst_9 : f32 to vector<128x8xf32>
    %26 = arith.select %22, %25, %24 : vector<128x8xi1>, vector<128x8xf32>
    %cst_10 = arith.constant dense<0xFF800000> : vector<128xf32>
    %27 = vector.multi_reduction <maximumf>, %26, %cst_10 [1] : vector<128x8xf32> to vector<128xf32>
    %28 = vector.shape_cast %27 : vector<128xf32> to vector<128x1xf32>
    %29 = vector.broadcast %28 : vector<128x1xf32> to vector<128x8xf32>
    %30 = arith.cmpf oeq, %26, %29 : vector<128x8xf32>
    %c8_i32_11 = arith.constant 8 : i32
    %31 = vector.broadcast %c8_i32_11 : i32 to vector<128x8xi32>
    %32 = arith.select %30, %12, %31 : vector<128x8xi1>, vector<128x8xi32>
    %cst_12 = arith.constant dense<2147483647> : vector<128xi32>
    %33 = vector.multi_reduction <minsi>, %32, %cst_12 [1] : vector<128x8xi32> to vector<128xi32>
    %34 = vector.shape_cast %33 : vector<128xi32> to vector<128x1xi32>
    %35 = vector.broadcast %34 : vector<128x1xi32> to vector<128x8xi32>
    %36 = arith.cmpi eq, %12, %35 : vector<128x8xi32>
    %cst_13 = arith.constant 0.000000e+00 : f32
    %37 = vector.broadcast %cst_13 : f32 to vector<128x8xf32>
    %38 = arith.select %36, %11, %37 : vector<128x8xi1>, vector<128x8xf32>
    %cst_14 = arith.constant dense<0.000000e+00> : vector<128xf32>
    %39 = vector.multi_reduction <add>, %38, %cst_14 [1] : vector<128x8xf32> to vector<128xf32>
    %40 = vector.shape_cast %39 : vector<128xf32> to vector<128x1xf32>
    %41 = arith.extui %22 : vector<128x8xi1> to vector<128x8xi32>
    %42 = arith.sitofp %41 : vector<128x8xi32> to vector<128x8xf32>
    %cst_15 = arith.constant dense<0.000000e+00> : vector<8xf32>
    %43 = vector.multi_reduction <add>, %42, %cst_15 [0] : vector<128x8xf32> to vector<8xf32>
    %44 = vector.shape_cast %43 : vector<8xf32> to vector<1x8xf32>
    %45 = arith.extui %36 : vector<128x8xi1> to vector<128x8xi32>
    %46 = arith.sitofp %45 : vector<128x8xi32> to vector<128x8xf32>
    %cst_16 = arith.constant dense<0.000000e+00> : vector<8xf32>
    %47 = vector.multi_reduction <add>, %46, %cst_16 [0] : vector<128x8xf32> to vector<8xf32>
    %48 = vector.shape_cast %47 : vector<8xf32> to vector<1x8xf32>
    %cst_17 = arith.constant dense<0.000000e+00> : vector<8xf32>
    %49 = vector.multi_reduction <add>, %11, %cst_17 [0] : vector<128x8xf32> to vector<8xf32>
    %50 = vector.shape_cast %49 : vector<8xf32> to vector<1x8xf32>
    %cst_18 = arith.constant 1.000000e+00 : f32
    %cst_19 = arith.constant 1.1920929E-7 : f32
    %51 = arith.subf %cst_18, %cst_19 : f32
    %cst_20 = arith.constant 1.1920929E-7 : f32
    %52 = vector.broadcast %cst_20 : f32 to vector<128x8xf32>
    %53 = arith.maximumf %52, %11 : vector<128x8xf32>
    %54 = vector.broadcast %51 : f32 to vector<128x8xf32>
    %55 = arith.minimumf %54, %53 : vector<128x8xf32>
    %56 = math.log %55 : vector<128x8xf32>
    %57 = arith.mulf %11, %56 : vector<128x8xf32>
    %cst_21 = arith.constant dense<0.000000e+00> : vector<8xf32>
    %58 = vector.multi_reduction <add>, %57, %cst_21 [0] : vector<128x8xf32> to vector<8xf32>
    %59 = vector.shape_cast %58 : vector<8xf32> to vector<1x8xf32>
    %60 = tpu.iota {dimensions = array<i32: 1>} : vector<128x4xi32>
    %c0_i32 = arith.constant 0 : i32
    %61 = vector.broadcast %c0_i32 : i32 to vector<128x4xi32>
    %62 = arith.cmpi eq, %60, %61 : vector<128x4xi32>
    %63 = arith.sitofp %20 : vector<128x1xi32> to vector<128x1xf32>
    %c1_i32 = arith.constant 1 : i32
    %64 = vector.broadcast %c1_i32 : i32 to vector<128x4xi32>
    %65 = arith.cmpi eq, %60, %64 : vector<128x4xi32>
    %66 = arith.sitofp %34 : vector<128x1xi32> to vector<128x1xf32>
    %c2_i32 = arith.constant 2 : i32
    %67 = vector.broadcast %c2_i32 : i32 to vector<128x4xi32>
    %68 = arith.cmpi eq, %60, %67 : vector<128x4xi32>
    %69 = vector.shape_cast %14 : vector<128x1xf32> to vector<128x1xf32>
    %70 = vector.broadcast %69 : vector<128x1xf32> to vector<128x4xf32>
    %71 = vector.shape_cast %40 : vector<128x1xf32> to vector<128x1xf32>
    %72 = vector.broadcast %71 : vector<128x1xf32> to vector<128x4xf32>
    %73 = arith.select %68, %70, %72 : vector<128x4xi1>, vector<128x4xf32>
    %74 = vector.shape_cast %66 : vector<128x1xf32> to vector<128x1xf32>
    %75 = vector.broadcast %74 : vector<128x1xf32> to vector<128x4xf32>
    %76 = arith.select %65, %75, %73 : vector<128x4xi1>, vector<128x4xf32>
    %77 = vector.shape_cast %63 : vector<128x1xf32> to vector<128x1xf32>
    %78 = vector.broadcast %77 : vector<128x1xf32> to vector<128x4xf32>
    %79 = arith.select %62, %78, %76 : vector<128x4xi1>, vector<128x4xf32>
    %c0_22 = arith.constant 0 : index
    %c0_23 = arith.constant 0 : index
    %80 = vector.load %arg4[%c0_22, %c0_23] : memref<128x4xf32, #tpu.memory_space<vmem>>, vector<128x4xf32>
    tpu.vector_store %arg4[%c0_22, %c0_23], %79 {strides = array<i32>} : memref<128x4xf32, #tpu.memory_space<vmem>>, vector<128x4xf32>,
    %81 = tpu.iota {dimensions = array<i32: 0>} : vector<4x8xi32>
    %c0_i32_24 = arith.constant 0 : i32
    %82 = vector.broadcast %c0_i32_24 : i32 to vector<4x8xi32>
    %83 = arith.cmpi eq, %81, %82 : vector<4x8xi32>
    %c1_i32_25 = arith.constant 1 : i32
    %84 = vector.broadcast %c1_i32_25 : i32 to vector<4x8xi32>
    %85 = arith.cmpi eq, %81, %84 : vector<4x8xi32>
    %c2_i32_26 = arith.constant 2 : i32
    %86 = vector.broadcast %c2_i32_26 : i32 to vector<4x8xi32>
    %87 = arith.cmpi eq, %81, %86 : vector<4x8xi32>
    %88 = vector.shape_cast %50 : vector<1x8xf32> to vector<1x8xf32>
    %89 = vector.broadcast %88 : vector<1x8xf32> to vector<4x8xf32>
    %90 = vector.shape_cast %59 : vector<1x8xf32> to vector<1x8xf32>
    %91 = vector.broadcast %90 : vector<1x8xf32> to vector<4x8xf32>
    %92 = arith.select %87, %89, %91 : vector<4x8xi1>, vector<4x8xf32>
    %93 = vector.shape_cast %48 : vector<1x8xf32> to vector<1x8xf32>
    %94 = vector.broadcast %93 : vector<1x8xf32> to vector<4x8xf32>
    %95 = arith.select %85, %94, %92 : vector<4x8xi1>, vector<4x8xf32>
    %96 = vector.shape_cast %44 : vector<1x8xf32> to vector<1x8xf32>
    %97 = vector.broadcast %96 : vector<1x8xf32> to vector<4x8xf32>
    %98 = arith.select %83, %97, %95 : vector<4x8xi1>, vector<4x8xf32>
    %99 = vector.shape_cast %98 : vector<4x8xf32> to vector<1x4x8xf32>
    %c0_27 = arith.constant 0 : index
    %c0_28 = arith.constant 0 : index
    %c0_29 = arith.constant 0 : index
    %100 = vector.load %arg5[%c0_27, %c0_28, %c0_29] : memref<1x4x8xf32, #tpu.memory_space<vmem>>, vector<1x4x8xf32>
    tpu.vector_store %arg5[%c0_27, %c0_28, %c0_29], %99 {strides = array<i32>} : memref<1x4x8xf32, #tpu.memory_space<vmem>>, vector<1x4x8xf32>,
    return
  }
  func.func @transform_0(%arg0: i32) -> (i32, i32) {
    %c0_i32 = arith.constant 0 : i32
    %c0_i32_0 = arith.constant 0 : i32
    return %arg0, %c0_i32 : i32, i32
  }
  func.func @transform_1(%arg0: i32) -> (i32, i32) {
    %c0_i32 = arith.constant 0 : i32
    %c0_i32_0 = arith.constant 0 : i32
    %c0_i32_1 = arith.constant 0 : i32
    return %c0_i32, %c0_i32_0 : i32, i32
  }
  func.func @transform_2(%arg0: i32) -> (i32, i32) {
    %c0_i32 = arith.constant 0 : i32
    %c0_i32_0 = arith.constant 0 : i32
    return %arg0, %c0_i32 : i32, i32
  }
  func.func @transform_3(%arg0: i32) -> (i32, i32) {
    %c0_i32 = arith.constant 0 : i32
    %c0_i32_0 = arith.constant 0 : i32
    return %arg0, %c0_i32 : i32, i32
  }
  func.func @transform_4(%arg0: i32) -> (i32, i32, i32) {
    %c0_i32 = arith.constant 0 : i32
    %c0_i32_0 = arith.constant 0 : i32
    %c0_i32_1 = arith.constant 0 : i32
    return %arg0, %c0_i32, %c0_i32_0 : i32, i32, i32
  }
}

</mosaic_0001>

<bundles_post_ra>
// kernel: tpu_custom_call.1
= control target key start
LH: loop header
LB: loop body
LE: loop exit
PB: predicated region body
PF: predicated region fallthrough
CT: control target
= control target key end

     0   :  { %10 = vsyncpa [#allocation3], 0  ;;  %s3984_s0 = inlined_call_operand.vmem [shape: f32[256,64], index: 0, kind: input, shape index: {}]   ;;  %s3985_s1 = inlined_call_operand.vmem [shape: f32[64,8], index: 1, kind: input, shape index: {}]   ;;  %s3986_s2 = inlined_call_operand.vmem [shape: f32[256,8], index: 2, kind: input, shape index: {}]   ;;  %s3987_s3 = inlined_call_operand.vmem [shape: f32[256,4], index: 3, kind: output, shape index: {0}]   ;;  %s3988_s4 = inlined_call_operand.hbm [shape: f32[2,4,8], index: 4, kind: output, shape index: {1}]  }
   0x1   :  { %12 = vsyncpa [#allocation3 + $0x1], 0  ;;  %s2314_s15 = smov 0   ;;  %s2316_s16 = smov 0  }
   0x2   :  { %s2318_s17 = smov 0   ;;  %s2320_s18 = smov 0  }
   0x3 LB: > { %s2335_s19 = sadd.s32 4294967295, %s2285_s18   ;;  %s1936_s20 = sadd.s32 4294967294, %s2285_s18   ;;  %s2285_s18 = sphi %s2320_s18, %s4127_s18   ;;  %s2281_s17 = sphi %s2318_s17, %s4126_s17   ;;  %s2277_s16 = sphi %s2316_s16, %s4125_s16   ;;  %s2273_s15 = sphi %s2314_s15, %s4124_s15  }
   0x4   : > { %s2339_s21 = sadd.s32 1, %s2285_s18   ;;  %s124_s22 = sadd.s32 1, %s2281_s17 }
   0x5   : > { %s121_s23 = ssub.s32 %s2285_s18, %s2339_s21  ;;  %p134_p0 = scmp.ne.s32.totalorder %s2281_s17, %s2277_s16 }
   0x6   : > { %p122_p1 = scmp.eq.s32.totalorder %s121_s23, 0  ;;  %p135_p2 = scmp.eq.s32.totalorder %s2335_s19, 1 }
   0x7   : > { %p140_p3 = scmp.ne.s32.totalorder %s2277_s16, %s2273_s15  ;;  %p141_p4 = scmp.eq.s32.totalorder %s1936_s20, 1 }
   0x8   : > { %s2350_s24 = scalar_select %p122_p1, %s2281_s17, %s124_s22  }
   0x9   : > { %p2352_p5 = por %p135_p2, %p134_p0  ;;  %p2356_p6 = por %p141_p4, %p140_p3 }
   0xa   : > { %p1939_p7 = scmp.ge.s32.totalorder %s2285_s18, 1  ;;  %p180_p8 = scmp.lt.s32.totalorder %s2285_s18, 3 }
   0xc   : > { %p181_p9 = pnand %p1939_p7, %p180_p8 }
   0xe   : > { %184 = sbr.rel (%p181_p9) target bundleno = 1639 (0x667), region = 32 }
  0x15   : > { %v250_v0 = vld [vmem:[%s3985_s1] sm:$0xff]  ;;  %v251_v1 = vld [vmem:[%s3985_s1 + $0x8] sm:$0xff]  ;;  %v252_v2 = vld [vmem:[%s3985_s1 + $0x10] sm:$0xff]  ;;  %s1941_s7 = sshll.u32 %s2335_s19, 4  ;;  %vm258_vm0 = vcmask 523264   ;;  %vm452_vm1 = vcmask 64512  }
  0x16   : > { %v2063_v3 = vpack.c.bf16 %v251_v1, %v250_v0  ;;  %v253_v4 = vld [vmem:[%s3985_s1 + $0x18] sm:$0xff]  ;;  %p217_p10 = scmp.lt.s32.totalorder %s1941_s7, 31  ;;  %v254_v6 = vld [vmem:[%s3985_s1 + $0x20] sm:$0xff]  ;;  %v255_v7 = vld [vmem:[%s3985_s1 + $0x28] sm:$0xff]  ;;  %s213_s8 = sand.u32 1, %s2277_s16  }
  0x17   : > { %v2067_v5 = vpack.c.bf16 %v253_v4, %v252_v2  ;;  %v2071_v8 = vpack.c.bf16 %v255_v7, %v254_v6  ;;  %v256_v9 = vld [vmem:[%s3985_s1 + $0x30] sm:$0xff]  ;;  %v257_v10 = vld [vmem:[%s3985_s1 + $0x38] sm:$0xff]  ;;  %s1940_s9 = sshll.u32 %s213_s8, 2  ;;  %s1996_s10 = sshll.u32 %s2335_s19, 6 }
  0x18   : > { %2064 = vmatprep.subr.bf16.mxu0 %v2063_v3  ;;  %2079 = vmatprep.subr.bf16.mxu1 %v2063_v3  ;;  %s4129_s7 = smov (!%p217_p10, %s1941_s7), 31  ;;  %v2075_v13 = vpack.c.bf16 %v257_v10, %v256_v9  ;;  %s215_s11 = scalar_lea.vmem [#allocation2], %s1940_s9 }
  0x19   : > { %2066 = vmatpush3.bf16.msra.mxu0 %v2063_v3  ;;  %2083 = vmatpush3.bf16.msra.mxu1 %v2063_v3  ;;  %s2381_s14 = sshll.u32 %s4129_s7, 3  ;;  %s1840_s12 = sshll.u32 %s215_s11, 4  ;;  %s3759_s12 = int_to_ptr.vmem [resolvable:$true] %s1840_s12 }
  0x1a   : > { %2068 = vmatprep.subr.bf16.mxu0 %v2067_v5  ;;  %2080 = vmatprep.subr.bf16.mxu1 %v2067_v5  ;;  %s2393_s30 = scalar_lea.vmem %s3984_s0, %s2381_s14  ;;  %s2931_s7 = scalar_lea.vmem %s3986_s2, %s2381_s14 }
  0x1b   : > { %v234_v11 = vld [vmem:[%s2393_s30] sm:$0xff]  ;;  %v235_v14 = vld [vmem:[%s2393_s30 + $0x8] sm:$0xff]  ;;  %v236_v16 = vld [vmem:[%s2393_s30 + $0x10] sm:$0xff]  ;;  %s3757_s22 = scalar_lea.hbm %s3988_s4, %s1996_s10  ;;  %s1823_s19 = scalar_lea.sflag [#allocation3], %s213_s8 }
  0x1c   : > { %v242_v12 = vld [vmem:[%s2393_s30 + $0x40] sm:$0xff]  ;;  %2039 = vmatprep.mubr.msk.f32.mxu0 %vm258_vm0, %v234_v11  ;;  %v243_v15 = vld [vmem:[%s2393_s30 + $0x48] sm:$0xff]  ;;  %v244_v17 = vld [vmem:[%s2393_s30 + $0x50] sm:$0xff]  ;;  %s2223_s23 = scalar_lea.vmem %s3759_s12, 64  ;;  %s2288_s27 = smov [#allocation2]  }
  0x1d   : > { %2070 = vmatpush3.bf16.msra.mxu0 %v2067_v5  ;;  %2084 = vmatpush3.bf16.msra.mxu1 %v2067_v5  ;;  %v237_v18 = vld [vmem:[%s2393_s30 + $0x18] sm:$0xff]  ;;  %v238_v20 = vld [vmem:[%s2393_s30 + $0x20] sm:$0xff]  ;;  %v239_v22 = vld [vmem:[%s2393_s30 + $0x28] sm:$0xff]  ;;  %p2224_p11 = scmp.ne.s32.totalorder %s3759_s12, %s2223_s23  ;;  %s2227_s28 = sshll.u32 %s2288_s27, 4  ;;  %s2228_s28 = int_to_ptr.vmem [resolvable:$false] %s2227_s28 }
  0x1e   : > { %2072 = vmatprep.subr.bf16.mxu0 %v2071_v8  ;;  %2081 = vmatprep.subr.bf16.mxu1 %v2071_v8  ;;  %v245_v19 = vld [vmem:[%s2393_s30 + $0x58] sm:$0xff]  ;;  %v246_v21 = vld [vmem:[%s2393_s30 + $0x60] sm:$0xff]  ;;  %v247_v23 = vld [vmem:[%s2393_s30 + $0x68] sm:$0xff]  ;;  %s2229_s29 = scalar_lea.vmem %s2228_s28, 128  ;;  %p2230_p0 = scmp.lt.s32.totalorder %s3759_s12, %s2228_s28 }
  0x1f   : > { %2051 = vmatprep.mubr.msk.f32.mxu1 %vm258_vm0, %v242_v12  ;;  %v240_v24 = vld [vmem:[%s2393_s30 + $0x30] sm:$0xff]  ;;  %v241_v26 = vld [vmem:[%s2393_s30 + $0x38] sm:$0xff]  ;;  %p2225_p12 = pnand %p2224_p11, %p2352_p5  ;;  %p2231_p1 = scmp.lt.s32.totalorder %s2229_s29, %s2223_s23 }
  0x20   : > { %v248_v25 = vld [vmem:[%s2393_s30 + $0x70] sm:$0xff]  ;;  %v249_v27 = vld [vmem:[%s2393_s30 + $0x78] sm:$0xff] }
  0x21   : > { %2074 = vmatpush3.bf16.msra.mxu0 %v2071_v8  ;;  %2085 = vmatpush3.bf16.msra.mxu1 %v2071_v8  ;;  %p2226_p13 = pneg %p2225_p12  ;;  %p2232_p2 = por %p2231_p1, %p2230_p0 }
  0x22   : > { %2076 = vmatprep.subr.bf16.mxu0 %v2075_v13  ;;  %2082 = vmatprep.subr.bf16.mxu1 %v2075_v13 }
  0x23   : > { %p2233_p3 = pnand %p2232_p2, %p2226_p13 }
  0x25   : > { %2078 = vmatpush3.bf16.msra.mxu0 %v2075_v13  ;;  %2086 = vmatpush3.bf16.msra.mxu1 %v2075_v13 }
  0x28   : > { %2040 = vmatmul.mubr.msk.f32.vlgmr.msra.gmra.mrb[0].mxu0 %vm258_vm0, %v235_v14  ;;  %2052 = vmatmul.mubr.msk.f32.vlgmr.msra.gmra.mrb[0].mxu1 %vm258_vm0, %v243_v15 }
  0x29   : > { %2042 = vmatprep.mubr.msk.f32.mxu0 %vm258_vm0, %v236_v16  ;;  %2054 = vmatprep.mubr.msk.f32.mxu1 %vm258_vm0, %v244_v17 }
  0x2c   : > { %2043 = vmatmul.mubr.msk.f32.gmra.mrb[2].mxu0 %vm258_vm0, %v237_v18  ;;  %2055 = vmatmul.mubr.msk.f32.gmra.mrb[2].mxu1 %vm258_vm0, %v245_v19 }
  0x2d   : > { %2045 = vmatprep.mubr.msk.f32.mxu0 %vm258_vm0, %v238_v20  ;;  %2057 = vmatprep.mubr.msk.f32.mxu1 %vm258_vm0, %v246_v21 }
  0x30   : > { %2046 = vmatmul.mubr.msk.f32.gmra.mrb[4].mxu0 %vm258_vm0, %v239_v22  ;;  %2058 = vmatmul.mubr.msk.f32.gmra.mrb[4].mxu1 %vm258_vm0, %v247_v23 }
  0x31   : > { %2048 = vmatprep.mubr.msk.f32.mxu0 %vm258_vm0, %v240_v24  ;;  %2060 = vmatprep.mubr.msk.f32.mxu1 %vm258_vm0, %v248_v25 }
  0x34   : > { %2049 = vmatmul.mubr.msk.f32.gmra.mrb[6].mxu0 %vm258_vm0, %v241_v26  ;;  %2061 = vmatmul.mubr.msk.f32.gmra.mrb[6].mxu1 %vm258_vm0, %v249_v27 }
  0xfb   : > { %v2427_v28 = vpop.f32.mrb[0].mxu0  ;;  %v2429_v29 = vpop.f32.mrb[0].mxu1 }
  0xfc   : > { %v2431_v30 = vpop.f32.mrb[1].mxu0  ;;  %v2433_v31 = vpop.f32.mrb[1].mxu1  ;;  %v480_v32 = vsel %vm452_vm1, %v2429_v29, -inf  ;;  %v456_v33 = vsel %vm452_vm1, %v2427_v28, -inf }
  0xfd   : > { %481 = vmax.xlane.f32.xlu1 %v480_v32  ;;  %457 = vmax.xlane.f32.xlu0 %v456_v33  ;;  %v453_v37 = vsel %vm452_vm1, %v2431_v30, -inf  ;;  %v477_v43 = vsel %vm452_vm1, %v2433_v31, -inf }
  0xff   : > { %v2439_v34 = vpop.f32.mrb[2].mxu0  ;;  %v2441_v35 = vpop.f32.mrb[2].mxu1 }
 0x100   : > { %v2443_v36 = vpop.f32.mrb[3].mxu0  ;;  %v462_v38 = vsel %vm452_vm1, %v2439_v34, -inf  ;;  %v2449_v39 = vpop.f32.mrb[3].mxu1  ;;  %v486_v40 = vsel %vm452_vm1, %v2441_v35, -inf }
 0x101   : > { %454 = vmax.xlane.f32.xlu0 %v453_v37  ;;  %463 = vmax.xlane.f32.xlu1 %v462_v38  ;;  %v483_v48 = vsel %vm452_vm1, %v2449_v39, -inf  ;;  %v459_v49 = vsel %vm452_vm1, %v2443_v36, -inf }
 0x103   : > { %v2453_v41 = vpop.f32.mrb[4].mxu0  ;;  %v2455_v42 = vpop.f32.mrb[4].mxu1 }
 0x104   : > { %v2459_v44 = vpop.f32.mrb[5].mxu0  ;;  %v2461_v45 = vpop.f32.mrb[5].mxu1  ;;  %v468_v52 = vsel %vm452_vm1, %v2453_v41, -inf  ;;  %v492_v54 = vsel %vm452_vm1, %v2455_v42, -inf }
 0x105   : > { %478 = vmax.xlane.f32.xlu0 %v477_v43  ;;  %487 = vmax.xlane.f32.xlu1 %v486_v40  ;;  %v465_v53 = vsel %vm452_vm1, %v2459_v44, -inf  ;;  %v489_v55 = vsel %vm452_vm1, %v2461_v45, -inf }
 0x107   : > { %v2463_v46 = vpop.f32.mrb[6].mxu0  ;;  %v2465_v47 = vpop.f32.mrb[6].mxu1 }
 0x108   : > { %v2471_v50 = vpop.f32.mrb[7].mxu0  ;;  %v2473_v51 = vpop.f32.mrb[7].mxu1  ;;  %v474_v56 = vsel %vm452_vm1, %v2463_v46, -inf  ;;  %v498_v58 = vsel %vm452_vm1, %v2465_v47, -inf }
 0x109   : > { %484 = vmax.xlane.f32.xlu0 %v483_v48  ;;  %460 = vmax.xlane.f32.xlu1 %v459_v49  ;;  %v471_v57 = vsel %vm452_vm1, %v2471_v50, -inf  ;;  %v495_v59 = vsel %vm452_vm1, %v2473_v51, -inf }
 0x10d   : > { %469 = vmax.xlane.f32.xlu1 %v468_v52  ;;  %466 = vmax.xlane.f32.xlu0 %v465_v53 }
 0x111   : > { %493 = vmax.xlane.f32.xlu1 %v492_v54  ;;  %490 = vmax.xlane.f32.xlu0 %v489_v55 }
 0x115   : > { %475 = vmax.xlane.f32.xlu1 %v474_v56  ;;  %472 = vmax.xlane.f32.xlu0 %v471_v57 }
 0x119   : > { %499 = vmax.xlane.f32.xlu1 %v498_v58  ;;  %496 = vmax.xlane.f32.xlu0 %v495_v59 }
 0x18a   : > { %v482_v60 = vpop.xlane.xlu1 %481  ;;  %v458_v61 = vpop.xlane.xlu0 %457 }
 0x18b   : > { %v510_v62 = vsub.f32 %v2429_v29, %v482_v60  ;;  %v502_v63 = vsub.f32 %v2427_v28, %v458_v61 }
 0x18d   : > { %v519_v0 = vmul.f32 1.442695, %v502_v63  ;;  %v535_v1 = vmul.f32 1.442695, %v510_v62 }
 0x18e   : > { %v455_v2 = vpop.xlane.xlu0 %454  ;;  %v464_v3 = vpop.xlane.xlu1 %463 }
 0x18f   : > { %v501_v4 = vsub.f32 %v2431_v30, %v455_v2  ;;  %v504_v5 = vsub.f32 %v2439_v34, %v464_v3  ;;  %2127 = vpow2.f32 %v519_v0 }
 0x190   : > { %2129 = vpow2.f32 %v535_v1 }
 0x191   : > { %v517_v6 = vmul.f32 1.442695, %v501_v4  ;;  %v523_v7 = vmul.f32 1.442695, %v504_v5 }
 0x192   : > { %v479_v8 = vpop.xlane.xlu0 %478  ;;  %v488_v9 = vpop.xlane.xlu1 %487 }
 0x193   : > { %2131 = vpow2.f32 %v517_v6  ;;  %v509_v10 = vsub.f32 %v2433_v31, %v479_v8  ;;  %v512_v11 = vsub.f32 %v2441_v35, %v488_v9 }
 0x194   : > { %2133 = vpow2.f32 %v523_v7 }
 0x195   : > { %v533_v12 = vmul.f32 1.442695, %v509_v10  ;;  %v539_v13 = vmul.f32 1.442695, %v512_v11 }
 0x196   : > { %v485_v14 = vpop.xlane.xlu0 %484  ;;  %v461_v15 = vpop.xlane.xlu1 %460 }
 0x197   : > { %2135 = vpow2.f32 %v533_v12  ;;  %v511_v16 = vsub.f32 %v2449_v39, %v485_v14  ;;  %v503_v17 = vsub.f32 %v2443_v36, %v461_v15 }
 0x198   : > { %2137 = vpow2.f32 %v539_v13 }
 0x199   : > { %v521_v18 = vmul.f32 1.442695, %v503_v17  ;;  %v2499_v19 = vpop.eup %2127  ;;  %v537_v20 = vmul.f32 1.442695, %v511_v16 }
 0x19a   : > { %v470_v21 = vpop.xlane.xlu1 %469  ;;  %v467_v22 = vpop.xlane.xlu0 %466  ;;  %v552_v25 = vsel %vm452_vm1, %v2499_v19, 0.0 }
 0x19b   : > { %v506_v23 = vsub.f32 %v2453_v41, %v470_v21  ;;  %v505_v24 = vsub.f32 %v2459_v44, %v467_v22  ;;  %v2505_v26 = vpop.eup %2129  ;;  %2139 = vpow2.f32 %v521_v18  ;;  %553 = vadd.xlane.f32.xlu1 %v552_v25 }
 0x19c   : > { %2141 = vpow2.f32 %v537_v20  ;;  %v576_v49 = vsel %vm452_vm1, %v2505_v26, 0.0 }
 0x19d   : > { %v2507_v27 = vpop.eup %2131  ;;  %v527_v32 = vmul.f32 1.442695, %v506_v23  ;;  %v525_v33 = vmul.f32 1.442695, %v505_v24 }
 0x19e   : > { %v494_v37 = vpop.xlane.xlu1 %493  ;;  %v491_v38 = vpop.xlane.xlu0 %490  ;;  %v549_v40 = vsel %vm452_vm1, %v2507_v27, 0.0 }
 0x19f   : > { %2143 = vpow2.f32 %v527_v32  ;;  %v514_v43 = vsub.f32 %v2455_v42, %v494_v37  ;;  %v513_v48 = vsub.f32 %v2461_v45, %v491_v38  ;;  %550 = vadd.xlane.f32.xlu0 %v549_v40  ;;  %v2515_v52 = vpop.eup %2133  ;;  %577 = vadd.xlane.f32.xlu1 %v576_v49 }
 0x1a0   : > { %2145 = vpow2.f32 %v525_v33  ;;  %v558_v62 = vsel %vm452_vm1, %v2515_v52, 0.0 }
 0x1a1   : > { %v2517_v53 = vpop.eup %2135  ;;  %v543_v54 = vmul.f32 1.442695, %v514_v43  ;;  %v541_v55 = vmul.f32 1.442695, %v513_v48 }
 0x1a2   : > { %v476_v56 = vpop.xlane.xlu1 %475  ;;  %v473_v57 = vpop.xlane.xlu0 %472  ;;  %v573_v58 = vsel %vm452_vm1, %v2517_v53, 0.0 }
 0x1a3   : > { %v2521_v59 = vpop.eup %2137  ;;  %2147 = vpow2.f32 %v543_v54  ;;  %v508_v60 = vsub.f32 %v2463_v46, %v476_v56  ;;  %v507_v61 = vsub.f32 %v2471_v50, %v473_v57  ;;  %574 = vadd.xlane.f32.xlu0 %v573_v58  ;;  %559 = vadd.xlane.f32.xlu1 %v558_v62 }
 0x1a4   : > { %2149 = vpow2.f32 %v541_v55  ;;  %v582_v4 = vsel %vm452_vm1, %v2521_v59, 0.0 }
 0x1a5   : > { %v531_v63 = vmul.f32 1.442695, %v508_v60  ;;  %v2527_v0 = vpop.eup %2139  ;;  %v529_v1 = vmul.f32 1.442695, %v507_v61 }
 0x1a6   : > { %v500_v2 = vpop.xlane.xlu1 %499  ;;  %v497_v3 = vpop.xlane.xlu0 %496  ;;  %v555_v7 = vsel %vm452_vm1, %v2527_v0, 0.0 }
 0x1a7   : > { %2151 = vpow2.f32 %v531_v63  ;;  %v516_v5 = vsub.f32 %v2465_v47, %v500_v2  ;;  %v515_v6 = vsub.f32 %v2473_v51, %v497_v3  ;;  %v2535_v8 = vpop.eup %2141  ;;  %583 = vadd.xlane.f32.xlu1 %v582_v4  ;;  %556 = vadd.xlane.f32.xlu0 %v555_v7 }
 0x1a8   : > { %2153 = vpow2.f32 %v529_v1  ;;  %v579_v13 = vsel %vm452_vm1, %v2535_v8, 0.0 }
 0x1a9   : > { %v2537_v9 = vpop.eup %2143  ;;  %v547_v10 = vmul.f32 1.442695, %v516_v5  ;;  %v545_v11 = vmul.f32 1.442695, %v515_v6 }
 0x1aa   : > { %v564_v12 = vsel %vm452_vm1, %v2537_v9, 0.0  ;;  %v2543_v14 = vpop.eup %2145 }
 0x1ab   : > { %2155 = vpow2.f32 %v547_v10  ;;  %565 = vadd.xlane.f32.xlu1 %v564_v12  ;;  %580 = vadd.xlane.f32.xlu0 %v579_v13  ;;  %v561_v17 = vsel %vm452_vm1, %v2543_v14, 0.0 }
 0x1ac   : > { %2157 = vpow2.f32 %v545_v11 }
 0x1ad   : > { %v2545_v15 = vpop.eup %2147 }
 0x1ae   : > { %v588_v16 = vsel %vm452_vm1, %v2545_v15, 0.0  ;;  %v2551_v18 = vpop.eup %2149 }
 0x1af   : > { %589 = vadd.xlane.f32.xlu1 %v588_v16  ;;  %562 = vadd.xlane.f32.xlu0 %v561_v17  ;;  %v585_v22 = vsel %vm452_vm1, %v2551_v18, 0.0 }
 0x1b1   : > { %v2553_v20 = vpop.eup %2151 }
 0x1b2   : > { %v570_v21 = vsel %vm452_vm1, %v2553_v20, 0.0  ;;  %v2559_v23 = vpop.eup %2153 }
 0x1b3   : > { %571 = vadd.xlane.f32.xlu1 %v570_v21  ;;  %586 = vadd.xlane.f32.xlu0 %v585_v22  ;;  %v567_v32 = vsel %vm452_vm1, %v2559_v23, 0.0 }
 0x1b5   : > { %v2561_v24 = vpop.eup %2155 }
 0x1b6   : > { %v594_v25 = vsel %vm452_vm1, %v2561_v24, 0.0  ;;  %v2567_v33 = vpop.eup %2157 }
 0x1b7   : > { %595 = vadd.xlane.f32.xlu1 %v594_v25  ;;  %568 = vadd.xlane.f32.xlu0 %v567_v32  ;;  %v591_v37 = vsel %vm452_vm1, %v2567_v33, 0.0 }
 0x1bb   : > { %592 = vadd.xlane.f32.xlu0 %v591_v37 }
 0x228   : > { %v554_v38 = vpop.xlane.xlu1 %553 }
 0x229   : > { %2159 = vrcp.f32 %v554_v38 }
 0x22c   : > { %v551_v40 = vpop.xlane.xlu0 %550  ;;  %v578_v43 = vpop.xlane.xlu1 %577 }
 0x22d   : > { %2161 = vrcp.f32 %v551_v40 }
 0x22e   : > { %2163 = vrcp.f32 %v578_v43 }
 0x230   : > { %v575_v48 = vpop.xlane.xlu0 %574  ;;  %v560_v49 = vpop.xlane.xlu1 %559 }
 0x231   : > { %2165 = vrcp.f32 %v575_v48 }
 0x232   : > { %2167 = vrcp.f32 %v560_v49 }
 0x233   : > { %v2160_v54 = vpop.eup %2159 }
 0x234   : > { %v2572_v55 = vmul.f32 %v2160_v54, %v2499_v19  ;;  %v584_v56 = vpop.xlane.xlu1 %583  ;;  %v557_v57 = vpop.xlane.xlu0 %556 }
 0x235   : > { %2169 = vrcp.f32 %v584_v56 }
 0x236   : > { %2171 = vrcp.f32 %v557_v57  ;;  %v634_v60 = vsel %vm452_vm1, %v2572_v55, -inf }
 0x237   : > { %v2162_v58 = vpop.eup %2161  ;;  %635 = vmax.xlane.f32.xlu1 %v634_v60 }
 0x238   : > { %v2164_v61 = vpop.eup %2163  ;;  %v2577_v62 = vmul.f32 %v2162_v58, %v2507_v27  ;;  %v566_v1 = vpop.xlane.xlu1 %565 }
 0x239   : > { %v2580_v63 = vmul.f32 %v2164_v61, %v2505_v26  ;;  %v581_v2 = vpop.xlane.xlu0 %580  ;;  %2173 = vrcp.f32 %v566_v1 }
 0x23a   : > { %v631_v19 = vsel %vm452_vm1, %v2577_v62, -inf  ;;  %2175 = vrcp.f32 %v581_v2 }
 0x23b   : > { %4044 = vst [vmem:[#allocation5_spill] sm:$0xff] %v2580_v63  ;;  %v2166_v3 = vpop.eup %2165  ;;  %632 = vmax.xlane.f32.xlu0 %v631_v19  ;;  %v658_v27 = vsel %vm452_vm1, %v2580_v63, -inf }
 0x23c   : > { %v2168_v4 = vpop.eup %2167  ;;  %v2585_v5 = vmul.f32 %v2166_v3, %v2517_v53  ;;  %659 = vmax.xlane.f32.xlu1 %v658_v27  ;;  %v590_v26 = vpop.xlane.xlu1 %589 }
 0x23d   : > { %v2590_v6 = vmul.f32 %v2168_v4, %v2515_v52  ;;  %v563_v7 = vpop.xlane.xlu0 %562  ;;  %2177 = vrcp.f32 %v590_v26  ;;  %v3989_v26 = vlaneseq }
 0x23e   : > { %4045 = vst [vmem:[#allocation6_spill] sm:$0xff] %v2585_v5  ;;  %v655_v10 = vsel %vm452_vm1, %v2585_v5, -inf  ;;  %2179 = vrcp.f32 %v563_v7 }
 0x23f   : > { %v640_v11 = vsel %vm452_vm1, %v2590_v6, -inf  ;;  %656 = vmax.xlane.f32.xlu0 %v655_v10  ;;  %v2170_v12 = vpop.eup %2169  ;;  %v2652_v7 = vand.u32 127, %v3989_v26 }
 0x240   : > { %v2172_v53 = vpop.eup %2171  ;;  %v2597_v13 = vmul.f32 %v2170_v12, %v2521_v59  ;;  %641 = vmax.xlane.f32.xlu1 %v640_v11  ;;  %v572_v16 = vpop.xlane.xlu1 %571 }
 0x241   : > { %v587_v52 = vpop.xlane.xlu0 %586  ;;  %v2600_v17 = vmul.f32 %v2172_v53, %v2527_v0  ;;  %2181 = vrcp.f32 %v572_v16 }
 0x242   : > { %4046 = vst [vmem:[#allocation7_spill] sm:$0xff] %v2597_v13  ;;  %v664_v21 = vsel %vm452_vm1, %v2597_v13, -inf  ;;  %2183 = vrcp.f32 %v587_v52 }
 0x243   : > { %v2174_v22 = vpop.eup %2173  ;;  %v637_v25 = vsel %vm452_vm1, %v2600_v17, -inf }
 0x244   : > { %v2607_v32 = vmul.f32 %v2174_v22, %v2537_v9  ;;  %665 = vmax.xlane.f32.xlu1 %v664_v21  ;;  %638 = vmax.xlane.f32.xlu0 %v637_v25  ;;  %v596_v59 = vpop.xlane.xlu1 %595  ;;  %v2176_v38 = vpop.eup %2175 }
 0x245   : > { %v569_v37 = vpop.xlane.xlu0 %568  ;;  %2185 = vrcp.f32 %v596_v59  ;;  %v2610_v0 = vmul.f32 %v2176_v38, %v2535_v8 }
 0x246   : > { %4047 = vst [vmem:[#allocation8_spill] sm:$0xff] %v2607_v32  ;;  %v646_v40 = vsel %vm452_vm1, %v2607_v32, -inf  ;;  %2187 = vrcp.f32 %v569_v37 }
 0x247   : > { %4048 = vst [vmem:[#allocation9_spill] sm:$0xff] %v2610_v0  ;;  %v2178_v43 = vpop.eup %2177  ;;  %v661_v9 = vsel %vm452_vm1, %v2610_v0, -inf }
 0x248   : > { %647 = vmax.xlane.f32.xlu1 %v646_v40  ;;  %662 = vmax.xlane.f32.xlu0 %v661_v9  ;;  %v2617_v49 = vmul.f32 %v2178_v43, %v2545_v15  ;;  %v2180_v54 = vpop.eup %2179 }
 0x249   : > { %v593_v48 = vpop.xlane.xlu0 %592  ;;  %v2620_v58 = vmul.f32 %v2180_v54, %v2543_v14 }
 0x24a   : > { %4049 = vst [vmem:[#allocation10_spill] sm:$0xff] %v2617_v49  ;;  %2189 = vrcp.f32 %v593_v48  ;;  %v670_v61 = vsel %vm452_vm1, %v2617_v49, -inf }
 0x24b   : > { %v2182_v56 = vpop.eup %2181  ;;  %v643_v19 = vsel %vm452_vm1, %v2620_v58, -inf }
 0x24c   : > { %v2184_v57 = vpop.eup %2183  ;;  %v2623_v60 = vmul.f32 %v2182_v56, %v2553_v20  ;;  %671 = vmax.xlane.f32.xlu1 %v670_v61  ;;  %644 = vmax.xlane.f32.xlu0 %v643_v19 }
 0x24d   : > { %v2628_v1 = vmul.f32 %v2184_v57, %v2551_v18 }
 0x24e   : > { %4050 = vst [vmem:[#allocation11_spill] sm:$0xff] %v2623_v60  ;;  %v652_v14 = vsel %vm452_vm1, %v2623_v60, -inf }
 0x24f   : > { %v2186_v8 = vpop.eup %2185  ;;  %4051 = vst [vmem:[#allocation12_spill] sm:$0xff] %v2628_v1  ;;  %v667_v3 = vsel %vm452_vm1, %v2628_v1, -inf }
 0x250   : > { %v2631_v15 = vmul.f32 %v2186_v8, %v2561_v24  ;;  %v2188_v2 = vpop.eup %2187  ;;  %653 = vmax.xlane.f32.xlu1 %v652_v14  ;;  %668 = vmax.xlane.f32.xlu0 %v667_v3 }
 0x251   : > { %v2638_v20 = vmul.f32 %v2188_v2, %v2559_v23 }
 0x252   : > { %4052 = vst [vmem:[#allocation13_spill] sm:$0xff] %v2631_v15  ;;  %v676_v18 = vsel %vm452_vm1, %v2631_v15, -inf }
 0x253   : > { %4053 = vst [vmem:[#allocation14_spill] sm:$0xff] %v2638_v20  ;;  %v649_v27 = vsel %vm452_vm1, %v2638_v20, -inf }
 0x254   : > { %v2190_v24 = vpop.eup %2189  ;;  %677 = vmax.xlane.f32.xlu1 %v676_v18  ;;  %650 = vmax.xlane.f32.xlu0 %v649_v27 }
 0x255   : > { %v2645_v4 = vmul.f32 %v2190_v24, %v2567_v33 }
 0x257   : > { %4054 = vst [vmem:[#allocation15_spill] sm:$0xff] %v2645_v4  ;;  %v673_v23 = vsel %vm452_vm1, %v2645_v4, -inf }
 0x258   : > { %674 = vmax.xlane.f32.xlu0 %v673_v23 }
 0x2c4   : > { %v2654_v10 = vpop.xlane.xlu1 %635 }
 0x2c5   : > { %4055 = vst [vmem:[#allocation16_spill] sm:$0xff] %v2654_v10  ;;  %vm680_vm2 = vcmp.eq.f32.partialorder %v2572_v55, %v2654_v10 }
 0x2c6   : > { %v696_v33 = vsel %vm680_vm2, %v2652_v7, 8 }
 0x2c7   : > { %v2662_v12 = vsel %vm452_vm1, %v696_v33, 2147483647 }
 0x2c8   : > { %v2659_v11 = vpop.xlane.xlu0 %632  ;;  %v728_v53 = vshra.s32 %v2662_v12, 16 }
 0x2c9   : > { %4056 = vst [vmem:[#allocation17_spill] sm:$0xff] %v2659_v11  ;;  %vm679_vm3 = vcmp.eq.f32.partialorder %v2577_v62, %v2659_v11  ;;  %v2667_v16 = vpop.xlane.xlu1 %659 }
 0x2ca   : > { %4057 = vst [vmem:[#allocation18_spill] sm:$0xff] %v2667_v16  ;;  %v695_v52 = vsel %vm679_vm3, %v2652_v7, 8  ;;  %vm688_vm4 = vcmp.eq.f32.partialorder %v2580_v63, %v2667_v16  ;;  %v2672_v21 = vcvt.s32.f32 %v728_v53 }
 0x2cb   : > { %v2675_v22 = vsel %vm452_vm1, %v695_v52, 2147483647  ;;  %v704_v59 = vsel %vm688_vm4, %v2652_v7, 8 }
 0x2cc   : > { %v2677_v25 = vpop.xlane.xlu0 %656  ;;  %v713_v37 = vshra.s32 %v2675_v22, 16  ;;  %731 = vmin.xlane.f32.xlu1 %v2672_v21  ;;  %v2685_v38 = vsel %vm452_vm1, %v704_v59, 2147483647 }
 0x2cd   : > { %4058 = vst [vmem:[#allocation19_spill] sm:$0xff] %v2677_v25  ;;  %vm687_vm5 = vcmp.eq.f32.partialorder %v2585_v5, %v2677_v25  ;;  %v2687_v40 = vpop.xlane.xlu1 %641  ;;  %v848_v43 = vshra.s32 %v2685_v38, 16  ;;  %v712_v5 = vand.u32 65535, %v2675_v22 }
 0x2ce   : > { %4059 = vst [vmem:[#allocation20_spill] sm:$0xff] %v2687_v40  ;;  %v2690_v9 = vcvt.s32.f32 %v713_v37  ;;  %v703_v48 = vsel %vm687_vm5, %v2652_v7, 8  ;;  %vm682_vm6 = vcmp.eq.f32.partialorder %v2590_v6, %v2687_v40 }
 0x2cf   : > { %v2696_v54 = vsel %vm452_vm1, %v703_v48, 2147483647  ;;  %v2698_v56 = vcvt.s32.f32 %v848_v43  ;;  %v698_v57 = vsel %vm682_vm6, %v2652_v7, 8 }
 0x2d0   : > { %716 = vmin.xlane.f32.xlu0 %v2690_v9  ;;  %v833_v8 = vshra.s32 %v2696_v54, 16  ;;  %v2704_v61 = vsel %vm452_vm1, %v698_v57, 2147483647 }
 0x2d1   : > { %851 = vmin.xlane.f32.xlu1 %v2698_v56  ;;  %v2707_v2 = vpop.xlane.xlu1 %665  ;;  %v2709_v19 = vpop.xlane.xlu0 %638  ;;  %v758_v14 = vshra.s32 %v2704_v61, 16 }
 0x2d2   : > { %4060 = vst [vmem:[#allocation21_spill] sm:$0xff] %v2707_v2  ;;  %4061 = vst [vmem:[#allocation22_spill] sm:$0xff] %v2709_v19  ;;  %v2712_v3 = vcvt.s32.f32 %v833_v8  ;;  %vm690_vm7 = vcmp.eq.f32.partialorder %v2597_v13, %v2707_v2  ;;  %vm681_vm8 = vcmp.eq.f32.partialorder %v2600_v17, %v2709_v19  ;;  %v727_v13 = vand.u32 65535, %v2662_v12 }
 0x2d3   : > { %v2718_v18 = vcvt.s32.f32 %v758_v14  ;;  %v706_v24 = vsel %vm690_vm7, %v2652_v7, 8  ;;  %v697_v27 = vsel %vm681_vm8, %v2652_v7, 8 }
 0x2d4   : > { %836 = vmin.xlane.f32.xlu0 %v2712_v3  ;;  %v2724_v23 = vsel %vm452_vm1, %v706_v24, 2147483647  ;;  %v2727_v33 = vsel %vm452_vm1, %v697_v27, 2147483647 }
 0x2d5   : > { %761 = vmin.xlane.f32.xlu1 %v2718_v18  ;;  %v2730_v53 = vpop.xlane.xlu1 %647  ;;  %v878_v52 = vshra.s32 %v2724_v23, 16  ;;  %v743_v59 = vshra.s32 %v2727_v33, 16  ;;  %v2736_v37 = vpop.xlane.xlu0 %662 }
 0x2d6   : > { %4062 = vst [vmem:[#allocation23_spill] sm:$0xff] %v2730_v53  ;;  %vm684_vm9 = vcmp.eq.f32.partialorder %v2607_v32, %v2730_v53  ;;  %4063 = vst [vmem:[#allocation24_spill] sm:$0xff] %v2736_v37  ;;  %vm689_vm10 = vcmp.eq.f32.partialorder %v2610_v0, %v2736_v37  ;;  %v832_v32 = vand.u32 65535, %v2696_v54 }
 0x2d7   : > { %v2738_v43 = vcvt.s32.f32 %v878_v52  ;;  %v2740_v48 = vcvt.s32.f32 %v743_v59  ;;  %v700_v57 = vsel %vm684_vm9, %v2652_v7, 8  ;;  %v705_v24 = vsel %vm689_vm10, %v2652_v7, 8 }
 0x2d8   : > { %v2746_v8 = vsel %vm452_vm1, %v700_v57, 2147483647  ;;  %v2753_v27 = vsel %vm452_vm1, %v705_v24, 2147483647 }
 0x2d9   : > { %881 = vmin.xlane.f32.xlu1 %v2738_v43  ;;  %746 = vmin.xlane.f32.xlu0 %v2740_v48  ;;  %v788_v14 = vshra.s32 %v2746_v8, 16  ;;  %v863_v59 = vshra.s32 %v2753_v27, 16  ;;  %v2758_v26 = vpop.xlane.xlu1 %671 }
 0x2da   : > { %4064 = vst [vmem:[#allocation25_spill] sm:$0xff] %v2758_v26  ;;  %vm692_vm11 = vcmp.eq.f32.partialorder %v2617_v49, %v2758_v26 }
 0x2db   : > { %v2755_v52 = vcvt.s32.f32 %v788_v14  ;;  %v2761_v57 = vcvt.s32.f32 %v863_v59  ;;  %v708_v37 = vsel %vm692_vm11, %v2652_v7, 8  ;;  %v2770_v14 = vpop.xlane.xlu0 %644 }
 0x2dc   : > { %v2768_v24 = vsel %vm452_vm1, %v708_v37, 2147483647  ;;  %4065 = vst [vmem:[#allocation26_spill] sm:$0xff] %v2770_v14  ;;  %vm683_vm12 = vcmp.eq.f32.partialorder %v2620_v58, %v2770_v14 }
 0x2dd   : > { %791 = vmin.xlane.f32.xlu1 %v2755_v52  ;;  %866 = vmin.xlane.f32.xlu0 %v2761_v57  ;;  %v2772_v53 = vpop.xlane.xlu1 %653  ;;  %v908_v19 = vshra.s32 %v2768_v24, 16  ;;  %v699_v26 = vsel %vm683_vm12, %v2652_v7, 8 }
 0x2de   : > { %4066 = vst [vmem:[#allocation27_spill] sm:$0xff] %v2772_v53  ;;  %vm686_vm13 = vcmp.eq.f32.partialorder %v2623_v60, %v2772_v53  ;;  %v2784_v37 = vsel %vm452_vm1, %v699_v26, 2147483647 }
 0x2df   : > { %v2779_v59 = vcvt.s32.f32 %v908_v19  ;;  %v702_v2 = vsel %vm686_vm13, %v2652_v7, 8  ;;  %v2789_v40 = vpop.xlane.xlu0 %668  ;;  %v773_v53 = vshra.s32 %v2784_v37, 16 }
 0x2e0   : > { %v2787_v25 = vsel %vm452_vm1, %v702_v2, 2147483647  ;;  %4067 = vst [vmem:[#allocation28_spill] sm:$0xff] %v2789_v40  ;;  %vm691_vm14 = vcmp.eq.f32.partialorder %v2628_v1, %v2789_v40 }
 0x2e1   : > { %911 = vmin.xlane.f32.xlu1 %v2779_v59  ;;  %v2792_v14 = vpop.xlane.xlu1 %677  ;;  %v818_v19 = vshra.s32 %v2787_v25, 16  ;;  %v2801_v2 = vcvt.s32.f32 %v773_v53  ;;  %v707_v11 = vsel %vm691_vm14, %v2652_v7, 8 }
 0x2e2   : > { %4068 = vst [vmem:[#allocation29_spill] sm:$0xff] %v2792_v14  ;;  %vm694_vm15 = vcmp.eq.f32.partialorder %v2631_v15, %v2792_v14  ;;  %v2807_v10 = vsel %vm452_vm1, %v707_v11, 2147483647 }
 0x2e3   : > { %v710_v26 = vsel %vm694_vm15, %v2652_v7, 8  ;;  %v2803_v16 = vcvt.s32.f32 %v818_v19  ;;  %776 = vmin.xlane.f32.xlu0 %v2801_v2  ;;  %v2813_v40 = vpop.xlane.xlu0 %650  ;;  %v893_v14 = vshra.s32 %v2807_v10, 16 }
 0x2e4   : > { %v2810_v49 = vsel %vm452_vm1, %v710_v26, 2147483647  ;;  %4069 = vst [vmem:[#allocation30_spill] sm:$0xff] %v2813_v40  ;;  %vm685_vm0 = vcmp.eq.f32.partialorder %v2638_v20, %v2813_v40 }
 0x2e5   : > { %821 = vmin.xlane.f32.xlu1 %v2803_v16  ;;  %v938_v53 = vshra.s32 %v2810_v49, 16  ;;  %v2820_v19 = vcvt.s32.f32 %v893_v14  ;;  %v701_v26 = vsel %vm685_vm0, %v2652_v7, 8 }
 0x2e6   : > { %v2826_v15 = vsel %vm452_vm1, %v701_v26, 2147483647 }
 0x2e7   : > { %v2822_v11 = vcvt.s32.f32 %v938_v53  ;;  %896 = vmin.xlane.f32.xlu0 %v2820_v19  ;;  %v2829_v1 = vpop.xlane.xlu0 %674  ;;  %v803_v0 = vshra.s32 %v2826_v15, 16 }
 0x2e8   : > { %4070 = vst [vmem:[#allocation31_spill] sm:$0xff] %v2829_v1  ;;  %vm693_vm2 = vcmp.eq.f32.partialorder %v2645_v4, %v2829_v1  ;;  %v729_v4 = vcvt.s32.f32 %v727_v13  ;;  %v757_v13 = vand.u32 65535, %v2704_v61  ;;  %v742_v61 = vand.u32 65535, %v2727_v33 }
 0x2e9   : > { %941 = vmin.xlane.f32.xlu1 %v2822_v11  ;;  %v709_v14 = vsel %vm693_vm2, %v2652_v7, 8  ;;  %v2836_v53 = vcvt.s32.f32 %v803_v0  ;;  %v847_v0 = vand.u32 65535, %v2685_v38  ;;  %v834_v38 = vcvt.s32.f32 %v832_v32 }
 0x2ea   : > { %v2839_v40 = vsel %vm452_vm1, %v709_v14, 2147483647 }
 0x2eb   : > { %806 = vmin.xlane.f32.xlu0 %v2836_v53  ;;  %v923_v26 = vshra.s32 %v2839_v40, 16  ;;  %v849_v22 = vcvt.s32.f32 %v847_v0  ;;  %v877_v0 = vand.u32 65535, %v2724_v23 }
 0x2ed   : > { %v2843_v60 = vcvt.s32.f32 %v923_v26  ;;  %v714_v26 = vcvt.s32.f32 %v712_v5 }
 0x2ef   : > { %926 = vmin.xlane.f32.xlu0 %v2843_v60 }
 0x359   : > { %v2848_v1 = vpop.xlane.xlu1 %731 }
 0x35a   : > { %vm733_vm3 = vcmp.eq.f32.partialorder %v2672_v21, %v2848_v1 }
 0x35b   : > { %v734_v14 = vsel %vm733_vm3, %v729_v4, inf }
 0x35c   : > { %735 = vmin.xlane.f32.xlu1 %v734_v14  ;;  %v879_v14 = vcvt.s32.f32 %v877_v0  ;;  %v817_v0 = vand.u32 65535, %v2787_v25 }
 0x35d   : > { %v2853_v20 = vpop.xlane.xlu0 %716 }
 0x35e   : > { %vm718_vm4 = vcmp.eq.f32.partialorder %v2690_v9, %v2853_v20  ;;  %v2858_v12 = vpop.xlane.xlu1 %851  ;;  %v759_v9 = vcvt.s32.f32 %v757_v13 }
 0x35f   : > { %v719_v63 = vsel %vm718_vm4, %v714_v26, inf  ;;  %vm853_vm5 = vcmp.eq.f32.partialorder %v2698_v56, %v2858_v12  ;;  %v787_v26 = vand.u32 65535, %v2746_v8 }
 0x360   : > { %720 = vmin.xlane.f32.xlu0 %v719_v63  ;;  %v854_v4 = vsel %vm853_vm5, %v849_v22, inf }
 0x361   : > { %v2863_v21 = vpop.xlane.xlu0 %836  ;;  %855 = vmin.xlane.f32.xlu1 %v854_v4  ;;  %v789_v13 = vcvt.s32.f32 %v787_v26 }
 0x362   : > { %vm838_vm6 = vcmp.eq.f32.partialorder %v2712_v3, %v2863_v21  ;;  %v2867_v5 = vpop.xlane.xlu1 %761  ;;  %v744_v3 = vcvt.s32.f32 %v742_v61 }
 0x363   : > { %v839_v54 = vsel %vm838_vm6, %v834_v38, inf  ;;  %vm763_vm7 = vcmp.eq.f32.partialorder %v2718_v18, %v2867_v5  ;;  %v862_v18 = vand.u32 65535, %v2753_v27 }
 0x364   : > { %840 = vmin.xlane.f32.xlu0 %v839_v54  ;;  %v764_v63 = vsel %vm763_vm7, %v759_v9, inf  ;;  %v772_v54 = vand.u32 65535, %v2784_v37 }
 0x365   : > { %765 = vmin.xlane.f32.xlu1 %v764_v63  ;;  %v864_v38 = vcvt.s32.f32 %v862_v18 }
 0x366   : > { %v2873_v56 = vpop.xlane.xlu1 %881  ;;  %v2875_v32 = vpop.xlane.xlu0 %746  ;;  %v774_v63 = vcvt.s32.f32 %v772_v54  ;;  %v843_v54 = vcvt.f32.s32 %v2863_v21 }
 0x367   : > { %vm883_vm8 = vcmp.eq.f32.partialorder %v2738_v43, %v2873_v56  ;;  %vm748_vm9 = vcmp.eq.f32.partialorder %v2740_v48, %v2875_v32  ;;  %v907_v48 = vand.u32 65535, %v2768_v24  ;;  %v892_v24 = vand.u32 65535, %v2807_v10 }
 0x368   : > { %v884_v23 = vsel %vm883_vm8, %v879_v14, inf  ;;  %v749_v33 = vsel %vm748_vm9, %v744_v3, inf  ;;  %v819_v14 = vcvt.s32.f32 %v817_v0  ;;  %v937_v3 = vand.u32 65535, %v2810_v49 }
 0x369   : > { %885 = vmin.xlane.f32.xlu1 %v884_v23  ;;  %750 = vmin.xlane.f32.xlu0 %v749_v33  ;;  %v909_v9 = vcvt.s32.f32 %v907_v48  ;;  %v894_v26 = vcvt.s32.f32 %v892_v24  ;;  %v802_v10 = vand.u32 65535, %v2826_v15  ;;  %v858_v48 = vcvt.f32.s32 %v2858_v12  ;;  %v976_v24 = vld [vmem:[%s2931_s7 + $0x48] sm:$0xff] }
 0x36a   : > { %v2883_v22 = vpop.xlane.xlu1 %791  ;;  %v2887_v4 = vpop.xlane.xlu0 %866  ;;  %v939_v33 = vcvt.s32.f32 %v937_v3  ;;  %v967_v3 = vld [vmem:[%s2931_s7] sm:$0xff] }
 0x36b   : > { %vm793_vm10 = vcmp.eq.f32.partialorder %v2755_v52, %v2883_v22  ;;  %vm868_vm11 = vcmp.eq.f32.partialorder %v2761_v57, %v2887_v4  ;;  %v804_v18 = vcvt.s32.f32 %v802_v10 }
 0x36c   : > { %v794_v8 = vsel %vm793_vm10, %v789_v13, inf  ;;  %v869_v43 = vsel %vm868_vm11, %v864_v38, inf  ;;  %v922_v13 = vand.u32 65535, %v2839_v40  ;;  %v738_v38 = vcvt.f32.s32 %v2848_v1 }
 0x36d   : > { %795 = vmin.xlane.f32.xlu1 %v794_v8  ;;  %870 = vmin.xlane.f32.xlu0 %v869_v43  ;;  %v723_v40 = vcvt.f32.s32 %v2853_v20  ;;  %v768_v20 = vcvt.f32.s32 %v2867_v5  ;;  %v992_v5 = vadd.f32 %v2429_v29, %v976_v24 }
 0x36e   : > { %v2892_v27 = vpop.xlane.xlu1 %911  ;;  %v739_v43 = vshll.u32 %v738_v38, 16 }
 0x36f   : > { %vm913_vm12 = vcmp.eq.f32.partialorder %v2779_v59, %v2892_v27 }
 0x370   : > { %v914_v52 = vsel %vm913_vm12, %v909_v9, inf  ;;  %v2898_v61 = vpop.xlane.xlu0 %776 }
 0x371   : > { %915 = vmin.xlane.f32.xlu1 %v914_v52  ;;  %vm778_vm13 = vcmp.eq.f32.partialorder %v2801_v2, %v2898_v61  ;;  %v724_v52 = vshll.u32 %v723_v40, 16  ;;  %v970_v40 = vld [vmem:[%s2931_s7 + $0x18] sm:$0xff] }
 0x372   : > { %v2900_v57 = vpop.xlane.xlu1 %821  ;;  %v779_v25 = vsel %vm778_vm13, %v774_v63, inf }
 0x373   : > { %vm823_vm14 = vcmp.eq.f32.partialorder %v2803_v16, %v2900_v57  ;;  %780 = vmin.xlane.f32.xlu0 %v779_v25  ;;  %v859_v25 = vshll.u32 %v858_v48, 16 }
 0x374   : > { %v824_v59 = vsel %vm823_vm14, %v819_v14, inf  ;;  %v2908_v37 = vpop.xlane.xlu0 %896 }
 0x375   : > { %825 = vmin.xlane.f32.xlu1 %v824_v59  ;;  %vm898_vm15 = vcmp.eq.f32.partialorder %v2820_v19, %v2908_v37  ;;  %v924_v19 = vcvt.s32.f32 %v922_v13 }
 0x376   : > { %v2910_v23 = vpop.xlane.xlu1 %941  ;;  %v899_v49 = vsel %vm898_vm15, %v894_v26, inf }
 0x377   : > { %vm943_vm0 = vcmp.eq.f32.partialorder %v2822_v11, %v2910_v23  ;;  %900 = vmin.xlane.f32.xlu0 %v899_v49  ;;  %v983_v49 = vadd.f32 %v967_v3, %v2431_v30 }
 0x378   : > { %v944_v16 = vsel %vm943_vm0, %v939_v33, inf  ;;  %v2917_v2 = vpop.xlane.xlu0 %806  ;;  %v844_v33 = vshll.u32 %v843_v54, 16 }
 0x379   : > { %945 = vmin.xlane.f32.xlu1 %v944_v16  ;;  %vm808_vm2 = vcmp.eq.f32.partialorder %v2836_v53, %v2917_v2  ;;  %v888_v16 = vcvt.f32.s32 %v2873_v56 }
 0x37a   : > { %v809_v15 = vsel %vm808_vm2, %v804_v18, inf }
 0x37b   : > { %810 = vmin.xlane.f32.xlu0 %v809_v15  ;;  %v975_v15 = vld [vmem:[%s2931_s7 + $0x40] sm:$0xff]  ;;  %v889_v24 = vshll.u32 %v888_v16, 16 }
 0x37c   : > { %v2922_v8 = vpop.xlane.xlu0 %926  ;;  %v991_v54 = vadd.f32 %v975_v15, %v2433_v31  ;;  %v798_v31 = vcvt.f32.s32 %v2883_v22 }
 0x37d   : > { %vm928_vm3 = vcmp.eq.f32.partialorder %v2843_v60, %v2922_v8  ;;  %v968_v60 = vld [vmem:[%s2931_s7 + $0x8] sm:$0xff] }
 0x37e   : > { %v929_v11 = vsel %vm928_vm3, %v924_v19, inf  ;;  %v984_v14 = vadd.f32 %v2427_v28, %v968_v60  ;;  %v753_v19 = vcvt.f32.s32 %v2875_v32 }
 0x37f   : > { %930 = vmin.xlane.f32.xlu0 %v929_v11  ;;  %v4028_v11 = vmov 0.0  }
 0x380   : > { %v754_v3 = vshll.u32 %v753_v19, 16 }
 0x3e9   : > { %v736_v53 = vpop.xlane.xlu1 %735 }
 0x3ea   : > { %v737_v9 = vcvt.f32.s32 %v736_v53  ;;  %v769_v53 = vshll.u32 %v768_v20, 16 }
 0x3ec   : > { %v2937_v0 = vadd.s32 %v739_v43, %v737_v9 }
 0x3ed   : > { %v721_v1 = vpop.xlane.xlu0 %720 }
 0x3ee   : > { %v722_v63 = vcvt.f32.s32 %v721_v1  ;;  %v856_v59 = vpop.xlane.xlu1 %855  ;;  %vm952_vm4 = vcmp.eq.s32.totalorder %v2652_v7, %v2937_v0 }
 0x3ef   : > { %v857_v12 = vcvt.f32.s32 %v856_v59  ;;  %v2950_v21 = vsel %vm952_vm4, -inf, %v984_v14  ;;  %v1964_v29 = vsel %vm952_vm4, 1.0, %v4028_v11  ;;  %v986_v14 = vadd.f32 %v2439_v34, %v970_v40 }
 0x3f0   : > { %v2945_v26 = vadd.s32 %v724_v52, %v722_v63  ;;  %v1018_v28 = vsel %vm452_vm1, %v2950_v21, -inf  ;;  %v1448_v1 = vsel %vm452_vm1, %v1964_v29, 0.0 }
 0x3f1   : > { %v841_v10 = vpop.xlane.xlu0 %840  ;;  %v2957_v18 = vadd.s32 %v859_v25, %v857_v12  ;;  %1019 = vmax.xlane.f32.xlu1 %v1018_v28  ;;  %v978_v28 = vld [vmem:[%s2931_s7 + $0x58] sm:$0xff] }
 0x3f2   : > { %v842_v13 = vcvt.f32.s32 %v841_v10  ;;  %vm951_vm5 = vcmp.eq.s32.totalorder %v2652_v7, %v2945_v26  ;;  %v766_v38 = vpop.xlane.xlu1 %765  ;;  %v994_v29 = vadd.f32 %v2441_v35, %v978_v28  ;;  %v828_v28 = vcvt.f32.s32 %v2900_v57 }
 0x3f3   : > { %v2967_v30 = vsel %vm951_vm5, -inf, %v983_v49  ;;  %v1963_v56 = vsel %vm951_vm5, 1.0, %v4028_v11  ;;  %v767_v43 = vcvt.f32.s32 %v766_v38  ;;  %vm960_vm6 = vcmp.eq.s32.totalorder %v2652_v7, %v2957_v18 }
 0x3f4   : > { %v2971_v48 = vadd.s32 %v844_v33, %v842_v13  ;;  %v2978_v32 = vsel %vm960_vm6, -inf, %v992_v5  ;;  %v1015_v9 = vsel %vm452_vm1, %v2967_v30, -inf  ;;  %v1447_v60 = vsel %vm452_vm1, %v1963_v56, 0.0  ;;  %v969_v13 = vld [vmem:[%s2931_s7 + $0x10] sm:$0xff] }
 0x3f5   : > { %v2985_v52 = vadd.s32 %v769_v53, %v767_v43  ;;  %v1042_v63 = vsel %vm452_vm1, %v2978_v32, -inf  ;;  %1016 = vmax.xlane.f32.xlu0 %v1015_v9  ;;  %v1449_v20 = vadd.f32 %v1448_v1, %v1447_v60  ;;  %v873_v5 = vcvt.f32.s32 %v2887_v4  ;;  %v972_v4 = vld [vmem:[%s2931_s7 + $0x28] sm:$0xff]  ;;  %v977_v1 = vld [vmem:[%s2931_s7 + $0x50] sm:$0xff] }
 0x3f6   : > { %4071 = vst [vmem:[#allocation32_spill] sm:$0xff] %v2971_v48  ;;  %1043 = vmax.xlane.f32.xlu1 %v1042_v63  ;;  %v886_v25 = vpop.xlane.xlu1 %885  ;;  %v751_v59 = vpop.xlane.xlu0 %750  ;;  %vm959_vm7 = vcmp.eq.s32.totalorder %v2652_v7, %v2971_v48  ;;  %v799_v38 = vshll.u32 %v798_v31, 16  ;;  %v985_v43 = vadd.f32 %v969_v13, %v2443_v36  ;;  %v918_v63 = vcvt.f32.s32 %v2892_v27 }
 0x3f7   : > { %v887_v12 = vcvt.f32.s32 %v886_v25  ;;  %v752_v33 = vcvt.f32.s32 %v751_v59  ;;  %vm954_vm8 = vcmp.eq.s32.totalorder %v2652_v7, %v2985_v52  ;;  %v3004_v10 = vsel %vm959_vm7, -inf, %v991_v54 }
 0x3f8   : > { %v2999_v34 = vsel %vm954_vm8, -inf, %v986_v14  ;;  %v1039_v19 = vsel %vm452_vm1, %v3004_v10, -inf  ;;  %v874_v9 = vshll.u32 %v873_v5, 16  ;;  %v1966_v36 = vsel %vm954_vm8, 1.0, %v4028_v11 }
 0x3f9   : > { %v3007_v22 = vadd.s32 %v889_v24, %v887_v12  ;;  %v3009_v49 = vadd.s32 %v754_v3, %v752_v33  ;;  %v1024_v16 = vsel %vm452_vm1, %v2999_v34, -inf  ;;  %1040 = vmax.xlane.f32.xlu0 %v1039_v19  ;;  %v988_v3 = vadd.f32 %v2453_v41, %v972_v4  ;;  %v980_v19 = vld [vmem:[%s2931_s7 + $0x68] sm:$0xff] }
 0x3fa   : > { %1025 = vmax.xlane.f32.xlu1 %v1024_v16  ;;  %v796_v15 = vpop.xlane.xlu1 %795  ;;  %v871_v40 = vpop.xlane.xlu0 %870  ;;  %v993_v41 = vadd.f32 %v977_v1, %v2449_v39  ;;  %v783_v12 = vcvt.f32.s32 %v2898_v61  ;;  %v919_v61 = vshll.u32 %v918_v63, 16  ;;  %v903_v4 = vcvt.f32.s32 %v2908_v37  ;;  %v971_v63 = vld [vmem:[%s2931_s7 + $0x20] sm:$0xff] }
 0x3fb   : > { %4072 = vst [vmem:[#allocation33_spill] sm:$0xff] %v3007_v22  ;;  %4073 = vst [vmem:[#allocation34_spill] sm:$0xff] %v3009_v49  ;;  %v797_v56 = vcvt.f32.s32 %v796_v15  ;;  %vm962_vm9 = vcmp.eq.s32.totalorder %v2652_v7, %v3007_v22  ;;  %vm953_vm10 = vcmp.eq.s32.totalorder %v2652_v7, %v3009_v49  ;;  %v872_v60 = vcvt.f32.s32 %v871_v40 }
 0x3fc   : > { %v3023_v53 = vsel %vm962_vm9, -inf, %v994_v29  ;;  %v3034_v14 = vsel %vm953_vm10, -inf, %v985_v43  ;;  %v1965_v24 = vsel %vm953_vm10, 1.0, %v4028_v11 }
 0x3fd   : > { %v3028_v35 = vadd.s32 %v799_v38, %v797_v56  ;;  %v1048_v54 = vsel %vm452_vm1, %v3023_v53, -inf  ;;  %v3042_v25 = vadd.s32 %v874_v9, %v872_v60  ;;  %v1021_v59 = vsel %vm452_vm1, %v3034_v14, -inf }
 0x3fe   : > { %1049 = vmax.xlane.f32.xlu1 %v1048_v54  ;;  %v1450_v31 = vsel %vm452_vm1, %v1965_v24, 0.0  ;;  %1022 = vmax.xlane.f32.xlu0 %v1021_v59  ;;  %v916_v5 = vpop.xlane.xlu1 %915  ;;  %v784_v38 = vshll.u32 %v783_v12, 16  ;;  %v829_v56 = vshll.u32 %v828_v28, 16  ;;  %v996_v9 = vadd.f32 %v2455_v42, %v980_v19 }
 0x3ff   : > { %4074 = vst [vmem:[#allocation35_spill] sm:$0xff] %v3028_v35  ;;  %4075 = vst [vmem:[#allocation36_spill] sm:$0xff] %v3042_v25  ;;  %v1451_v27 = vadd.f32 %v1450_v31, %v1449_v20  ;;  %vm956_vm11 = vcmp.eq.s32.totalorder %v2652_v7, %v3028_v35  ;;  %vm961_vm12 = vcmp.eq.s32.totalorder %v2652_v7, %v3042_v25  ;;  %v1452_v20 = vsel %vm452_vm1, %v1966_v36, 0.0  ;;  %v979_v36 = vld [vmem:[%s2931_s7 + $0x60] sm:$0xff] }
 0x400   : > { %v3054_v33 = vsel %vm956_vm11, -inf, %v988_v3  ;;  %v3065_v39 = vsel %vm961_vm12, -inf, %v993_v41  ;;  %v917_v13 = vcvt.f32.s32 %v916_v5  ;;  %v781_v40 = vpop.xlane.xlu0 %780  ;;  %v948_v60 = vcvt.f32.s32 %v2910_v23  ;;  %v974_v23 = vld [vmem:[%s2931_s7 + $0x38] sm:$0xff] }
 0x401   : > { %v1030_v16 = vsel %vm452_vm1, %v3054_v33, -inf  ;;  %v1045_v15 = vsel %vm452_vm1, %v3065_v39, -inf  ;;  %v1453_v57 = vadd.f32 %v1452_v20, %v1451_v27  ;;  %v782_v54 = vcvt.f32.s32 %v781_v40  ;;  %v973_v40 = vld [vmem:[%s2931_s7 + $0x30] sm:$0xff] }
 0x402   : > { %1031 = vmax.xlane.f32.xlu1 %v1030_v16  ;;  %1046 = vmax.xlane.f32.xlu0 %v1045_v15  ;;  %v3070_v29 = vadd.s32 %v919_v61, %v917_v13  ;;  %v826_v43 = vpop.xlane.xlu1 %825  ;;  %v904_v59 = vshll.u32 %v903_v4, 16  ;;  %v987_v41 = vadd.f32 %v971_v63, %v2459_v44  ;;  %v949_v12 = vshll.u32 %v948_v60, 16  ;;  %v982_v16 = vld [vmem:[%s2931_s7 + $0x78] sm:$0xff] }
 0x403   : > { %v827_v1 = vcvt.f32.s32 %v826_v43  ;;  %v3083_v3 = vadd.s32 %v784_v38, %v782_v54  ;;  %v813_v28 = vcvt.f32.s32 %v2917_v2  ;;  %v990_v61 = vadd.f32 %v2463_v46, %v974_v23 }
 0x404   : > { %4076 = vst [vmem:[#allocation37_spill] sm:$0xff] %v3070_v29  ;;  %vm964_vm13 = vcmp.eq.s32.totalorder %v2652_v7, %v3070_v29  ;;  %v901_v31 = vpop.xlane.xlu0 %900  ;;  %v995_v13 = vadd.f32 %v979_v36, %v2461_v45  ;;  %v998_v45 = vadd.f32 %v2465_v47, %v982_v16 }
 0x405   : > { %v3081_v24 = vsel %vm964_vm13, -inf, %v996_v9  ;;  %4077 = vst [vmem:[#allocation38_spill] sm:$0xff] %v3083_v3  ;;  %v3085_v37 = vadd.s32 %v829_v56, %v827_v1  ;;  %v902_v20 = vcvt.f32.s32 %v901_v31  ;;  %vm955_vm14 = vcmp.eq.s32.totalorder %v2652_v7, %v3083_v3  ;;  %v981_v31 = vld [vmem:[%s2931_s7 + $0x70] sm:$0xff] }
 0x406   : > { %v1054_v42 = vsel %vm452_vm1, %v3081_v24, -inf  ;;  %v946_v27 = vpop.xlane.xlu1 %945  ;;  %v3104_v19 = vsel %vm955_vm14, -inf, %v987_v41  ;;  %v1967_v2 = vsel %vm955_vm14, 1.0, %v4028_v11  ;;  %v814_v43 = vshll.u32 %v813_v28, 16 }
 0x407   : > { %4078 = vst [vmem:[#allocation39_spill] sm:$0xff] %v3085_v37  ;;  %1055 = vmax.xlane.f32.xlu1 %v1054_v42  ;;  %v947_v5 = vcvt.f32.s32 %v946_v27  ;;  %vm958_vm15 = vcmp.eq.s32.totalorder %v2652_v7, %v3085_v37  ;;  %v3100_v15 = vadd.s32 %v904_v59, %v902_v20  ;;  %v1027_v38 = vsel %vm452_vm1, %v3104_v19, -inf  ;;  %v4090_v37 = vld [vmem:[#allocation10_spill] sm:$0xff] }
 0x408   : > { %v1454_v56 = vsel %vm452_vm1, %v1967_v2, 0.0  ;;  %v811_v4 = vpop.xlane.xlu0 %810  ;;  %v3113_v46 = vsel %vm958_vm15, -inf, %v990_v61  ;;  %v933_v9 = vcvt.f32.s32 %v2922_v8  ;;  %1028 = vmax.xlane.f32.xlu0 %v1027_v38  ;;  %v1968_v1 = vsel %vm956_vm11, 1.0, %v4028_v11 }
 0x409   : > { %4079 = vst [vmem:[#allocation40_spill] sm:$0xff] %v3100_v15  ;;  %v3102_v44 = vadd.s32 %v949_v12, %v947_v5  ;;  %v1455_v60 = vadd.f32 %v1454_v56, %v1453_v57  ;;  %v812_v54 = vcvt.f32.s32 %v811_v4  ;;  %v1036_v63 = vsel %vm452_vm1, %v3113_v46, -inf }
 0x40a   : > { %vm963_vm0 = vcmp.eq.s32.totalorder %v2652_v7, %v3100_v15  ;;  %v989_v42 = vadd.f32 %v973_v40, %v2471_v50  ;;  %v934_v27 = vshll.u32 %v933_v9, 16  ;;  %v1456_v41 = vsel %vm452_vm1, %v1968_v1, 0.0 }
 0x40b   : > { %4080 = vst [vmem:[#allocation41_spill] sm:$0xff] %v3102_v44  ;;  %vm966_vm2 = vcmp.eq.s32.totalorder %v2652_v7, %v3102_v44  ;;  %v3128_v47 = vadd.s32 %v814_v43, %v812_v54  ;;  %1037 = vmax.xlane.f32.xlu1 %v1036_v63  ;;  %v3133_v8 = vsel %vm963_vm0, -inf, %v995_v13  ;;  %v1970_v50 = vsel %vm958_vm15, 1.0, %v4028_v11 }
 0x40c   : > { %v3138_v57 = vsel %vm966_vm2, -inf, %v998_v45  ;;  %v1051_v23 = vsel %vm452_vm1, %v3133_v8, -inf  ;;  %v931_v36 = vpop.xlane.xlu0 %930  ;;  %v1457_v5 = vadd.f32 %v1456_v41, %v1455_v60  ;;  %v997_v2 = vadd.f32 %v981_v31, %v2473_v51 }
 0x40d   : > { %4081 = vst [vmem:[#allocation42_spill] sm:$0xff] %v3128_v47  ;;  %v1060_v59 = vsel %vm452_vm1, %v3138_v57, -inf  ;;  %1052 = vmax.xlane.f32.xlu0 %v1051_v23  ;;  %v932_v12 = vcvt.f32.s32 %v931_v36  ;;  %vm957_vm3 = vcmp.eq.s32.totalorder %v2652_v7, %v3128_v47  ;;  %v1971_v38 = vsel %vm959_vm7, 1.0, %v4028_v11 }
 0x40e   : > { %v3153_v28 = vsel %vm957_vm3, -inf, %v989_v42  ;;  %v1969_v20 = vsel %vm957_vm3, 1.0, %v4028_v11  ;;  %v1460_v4 = vsel %vm452_vm1, %v1970_v50, 0.0  ;;  %v1972_v45 = vsel %vm960_vm6, 1.0, %v4028_v11 }
 0x40f   : > { %v3156_v16 = vadd.s32 %v934_v27, %v932_v12  ;;  %1061 = vmax.xlane.f32.xlu1 %v1060_v59  ;;  %v1033_v61 = vsel %vm452_vm1, %v3153_v28, -inf  ;;  %v1458_v13 = vsel %vm452_vm1, %v1969_v20, 0.0  ;;  %v1462_v43 = vsel %vm452_vm1, %v1971_v38, 0.0 }
 0x410   : > { %v1459_v56 = vadd.f32 %v1458_v13, %v1457_v5  ;;  %v1973_v60 = vsel %vm961_vm12, 1.0, %v4028_v11  ;;  %v1464_v1 = vsel %vm452_vm1, %v1972_v45, 0.0  ;;  %v1974_v63 = vsel %vm962_vm9, 1.0, %v4028_v11 }
 0x411   : > { %4082 = vst [vmem:[#allocation43_spill] sm:$0xff] %v3156_v16  ;;  %1034 = vmax.xlane.f32.xlu0 %v1033_v61  ;;  %vm965_vm4 = vcmp.eq.s32.totalorder %v2652_v7, %v3156_v16  ;;  %v1466_v23 = vsel %vm452_vm1, %v1973_v60, 0.0  ;;  %v1975_v36 = vsel %vm963_vm0, 1.0, %v4028_v11  ;;  %v1468_v31 = vsel %vm452_vm1, %v1974_v63, 0.0 }
 0x412   : > { %v1461_v40 = vadd.f32 %v1460_v4, %v1459_v56  ;;  %v3176_v51 = vsel %vm965_vm4, -inf, %v997_v2  ;;  %v1976_v27 = vsel %vm964_vm13, 1.0, %v4028_v11  ;;  %v1470_v12 = vsel %vm452_vm1, %v1975_v36, 0.0 }
 0x413   : > { %v1057_v9 = vsel %vm452_vm1, %v3176_v51, -inf  ;;  %v1977_v50 = vsel %vm965_vm4, 1.0, %v4028_v11  ;;  %v1472_v5 = vsel %vm452_vm1, %v1976_v27, 0.0  ;;  %v1978_v61 = vsel %vm966_vm2, 1.0, %v4028_v11 }
 0x414   : > { %v1463_v54 = vadd.f32 %v1462_v43, %v1461_v40  ;;  %v1474_v2 = vsel %vm452_vm1, %v1977_v50, 0.0  ;;  %v1476_v56 = vsel %vm452_vm1, %v1978_v61, 0.0  ;;  %v1603_v3 = vmax.f32 %v4090_v37, 1.1920929e-07 }
 0x415   : > { %1058 = vmax.xlane.f32.xlu0 %v1057_v9 }
 0x416   : > { %v1465_v42 = vadd.f32 %v1464_v1, %v1463_v54 }
 0x418   : > { %v1467_v59 = vadd.f32 %v1466_v23, %v1465_v42 }
 0x41a   : > { %v1469_v41 = vadd.f32 %v1468_v31, %v1467_v59 }
 0x41c   : > { %v1471_v20 = vadd.f32 %v1470_v12, %v1469_v41 }
 0x41e   : > { %v1473_v13 = vadd.f32 %v1472_v5, %v1471_v20 }
 0x420   : > { %v1475_v38 = vadd.f32 %v1474_v2, %v1473_v13 }
 0x422   : > { %v3212_v4 = vadd.f32 %v1476_v56, %v1475_v38 }
 0x47e   : > { %v1020_v45 = vpop.xlane.xlu1 %1019 }
 0x47f   : > { %vm1064_vm5 = vcmp.eq.f32.partialorder %v2950_v21, %v1020_v45 }
 0x480   : > { %v1080_v40 = vsel %vm1064_vm5, %v2652_v7, 8 }
 0x481   : > { %v3217_v43 = vsel %vm452_vm1, %v1080_v40, 2147483647 }
 0x482   : > { %v1017_v9 = vpop.xlane.xlu0 %1016  ;;  %v1112_v60 = vshra.s32 %v3217_v43, 16 }
 0x483   : > { %v1044_v54 = vpop.xlane.xlu1 %1043  ;;  %vm1063_vm6 = vcmp.eq.f32.partialorder %v2967_v30, %v1017_v9 }
 0x484   : > { %vm1072_vm7 = vcmp.eq.f32.partialorder %v2978_v32, %v1044_v54  ;;  %v1079_v1 = vsel %vm1063_vm6, %v2652_v7, 8  ;;  %v3223_v63 = vcvt.s32.f32 %v1112_v60 }
 0x485   : > { %v1088_v42 = vsel %vm1072_vm7, %v2652_v7, 8  ;;  %v3227_v21 = vsel %vm452_vm1, %v1079_v1, 2147483647 }
 0x486   : > { %v3230_v23 = vsel %vm452_vm1, %v1088_v42, 2147483647  ;;  %1115 = vmin.xlane.f32.xlu1 %v3223_v63  ;;  %v1097_v36 = vshra.s32 %v3227_v21, 16  ;;  %v1041_v32 = vpop.xlane.xlu0 %1040 }
 0x487   : > { %v1232_v30 = vshra.s32 %v3230_v23, 16  ;;  %v1026_v59 = vpop.xlane.xlu1 %1025  ;;  %vm1071_vm9 = vcmp.eq.f32.partialorder %v3004_v10, %v1041_v32 }
 0x488   : > { %vm1066_vm8 = vcmp.eq.f32.partialorder %v2999_v34, %v1026_v59  ;;  %v3236_v31 = vcvt.s32.f32 %v1097_v36  ;;  %v1087_v50 = vsel %vm1071_vm9, %v2652_v7, 8 }
 0x489   : > { %v1082_v27 = vsel %vm1066_vm8, %v2652_v7, 8  ;;  %v3240_v41 = vcvt.s32.f32 %v1232_v30  ;;  %v3249_v34 = vsel %vm452_vm1, %v1087_v50, 2147483647 }
 0x48a   : > { %v3243_v12 = vsel %vm452_vm1, %v1082_v27, 2147483647  ;;  %1100 = vmin.xlane.f32.xlu0 %v3236_v31  ;;  %v1217_v61 = vshra.s32 %v3249_v34, 16 }
 0x48b   : > { %v1142_v20 = vshra.s32 %v3243_v12, 16  ;;  %1235 = vmin.xlane.f32.xlu1 %v3240_v41  ;;  %v1050_v5 = vpop.xlane.xlu1 %1049  ;;  %v1023_v13 = vpop.xlane.xlu0 %1022  ;;  %v1141_v11 = vand.u32 65535, %v3243_v12 }
 0x48c   : > { %vm1074_vm10 = vcmp.eq.f32.partialorder %v3023_v53, %v1050_v5  ;;  %vm1065_vm11 = vcmp.eq.f32.partialorder %v3034_v14, %v1023_v13  ;;  %v3261_v56 = vcvt.s32.f32 %v1217_v61 }
 0x48d   : > { %v1090_v10 = vsel %vm1074_vm10, %v2652_v7, 8  ;;  %v3255_v2 = vcvt.s32.f32 %v1142_v20  ;;  %v1081_v40 = vsel %vm1065_vm11, %v2652_v7, 8  ;;  %v1143_v12 = vcvt.s32.f32 %v1141_v11 }
 0x48e   : > { %v3258_v38 = vsel %vm452_vm1, %v1090_v10, 2147483647  ;;  %v3267_v53 = vsel %vm452_vm1, %v1081_v40, 2147483647  ;;  %1220 = vmin.xlane.f32.xlu0 %v3261_v56 }
 0x48f   : > { %v1262_v45 = vshra.s32 %v3258_v38, 16  ;;  %1145 = vmin.xlane.f32.xlu1 %v3255_v2  ;;  %v1032_v9 = vpop.xlane.xlu1 %1031  ;;  %v1127_v60 = vshra.s32 %v3267_v53, 16  ;;  %v1047_v54 = vpop.xlane.xlu0 %1046 }
 0x490   : > { %vm1068_vm12 = vcmp.eq.f32.partialorder %v3054_v33, %v1032_v9  ;;  %vm1073_vm13 = vcmp.eq.f32.partialorder %v3065_v39, %v1047_v54 }
 0x491   : > { %v3272_v14 = vcvt.s32.f32 %v1262_v45  ;;  %v1084_v1 = vsel %vm1068_vm12, %v2652_v7, 8  ;;  %v1089_v36 = vsel %vm1073_vm13, %v2652_v7, 8  ;;  %v3281_v30 = vcvt.s32.f32 %v1127_v60 }
 0x492   : > { %v3277_v42 = vsel %vm452_vm1, %v1084_v1, 2147483647  ;;  %v3285_v33 = vsel %vm452_vm1, %v1089_v36, 2147483647 }
 0x493   : > { %1265 = vmin.xlane.f32.xlu1 %v3272_v14  ;;  %v1172_v59 = vshra.s32 %v3277_v42, 16  ;;  %v1247_v32 = vshra.s32 %v3285_v33, 16  ;;  %1130 = vmin.xlane.f32.xlu0 %v3281_v30  ;;  %v1171_v11 = vand.u32 65535, %v3277_v42 }
 0x494   : > { %v1056_v39 = vpop.xlane.xlu1 %1055 }
 0x495   : > { %v3289_v27 = vcvt.s32.f32 %v1172_v59  ;;  %v3291_v50 = vcvt.s32.f32 %v1247_v32  ;;  %vm1076_vm14 = vcmp.eq.f32.partialorder %v3081_v24, %v1056_v39  ;;  %v1029_v10 = vpop.xlane.xlu0 %1028 }
 0x496   : > { %v1092_v20 = vsel %vm1076_vm14, %v2652_v7, 8  ;;  %vm1067_vm15 = vcmp.eq.f32.partialorder %v3104_v19, %v1029_v10 }
 0x497   : > { %1175 = vmin.xlane.f32.xlu1 %v3289_v27  ;;  %1250 = vmin.xlane.f32.xlu0 %v3291_v50  ;;  %v3298_v5 = vsel %vm452_vm1, %v1092_v20, 2147483647  ;;  %v1083_v45 = vsel %vm1067_vm15, %v2652_v7, 8 }
 0x498   : > { %v1292_v61 = vshra.s32 %v3298_v5, 16  ;;  %v1038_v40 = vpop.xlane.xlu1 %1037  ;;  %v3306_v24 = vsel %vm452_vm1, %v1083_v45, 2147483647 }
 0x499   : > { %vm1070_vm0 = vcmp.eq.f32.partialorder %v3113_v46, %v1038_v40  ;;  %v1157_v9 = vshra.s32 %v3306_v24, 16 }
 0x49a   : > { %v3302_v13 = vcvt.s32.f32 %v1292_v61  ;;  %v1086_v60 = vsel %vm1070_vm0, %v2652_v7, 8  ;;  %v1053_v54 = vpop.xlane.xlu0 %1052 }
 0x49b   : > { %v3313_v1 = vsel %vm452_vm1, %v1086_v60, 2147483647  ;;  %vm1075_vm2 = vcmp.eq.f32.partialorder %v3133_v8, %v1053_v54  ;;  %v3318_v32 = vcvt.s32.f32 %v1157_v9 }
 0x49c   : > { %1295 = vmin.xlane.f32.xlu1 %v3302_v13  ;;  %v1202_v19 = vshra.s32 %v3313_v1, 16  ;;  %v1091_v36 = vsel %vm1075_vm2, %v2652_v7, 8  ;;  %v1062_v59 = vpop.xlane.xlu1 %1061 }
 0x49d   : > { %v3321_v46 = vsel %vm452_vm1, %v1091_v36, 2147483647  ;;  %vm1078_vm3 = vcmp.eq.f32.partialorder %v3138_v57, %v1062_v59  ;;  %1160 = vmin.xlane.f32.xlu0 %v3318_v32 }
 0x49e   : > { %v1277_v39 = vshra.s32 %v3321_v46, 16  ;;  %v1094_v20 = vsel %vm1078_vm3, %v2652_v7, 8  ;;  %v1035_v61 = vpop.xlane.xlu0 %1034  ;;  %v3327_v8 = vcvt.s32.f32 %v1202_v19 }
 0x49f   : > { %v3330_v10 = vsel %vm452_vm1, %v1094_v20, 2147483647  ;;  %vm1069_vm4 = vcmp.eq.f32.partialorder %v3153_v28, %v1035_v61  ;;  %v1111_v61 = vand.u32 65535, %v3217_v43 }
 0x4a0   : > { %v1322_v45 = vshra.s32 %v3330_v10, 16  ;;  %v1085_v40 = vsel %vm1069_vm4, %v2652_v7, 8  ;;  %1205 = vmin.xlane.f32.xlu1 %v3327_v8  ;;  %v3336_v57 = vcvt.s32.f32 %v1277_v39 }
 0x4a1   : > { %v3339_v9 = vsel %vm452_vm1, %v1085_v40, 2147483647  ;;  %v1113_v40 = vcvt.s32.f32 %v1111_v61  ;;  %v1261_v61 = vand.u32 65535, %v3258_v38 }
 0x4a2   : > { %v1187_v60 = vshra.s32 %v3339_v9, 16  ;;  %1280 = vmin.xlane.f32.xlu0 %v3336_v57  ;;  %v1059_v54 = vpop.xlane.xlu0 %1058  ;;  %v3343_v19 = vcvt.s32.f32 %v1322_v45 }
 0x4a3   : > { %vm1077_vm5 = vcmp.eq.f32.partialorder %v3176_v51, %v1059_v54  ;;  %v1096_v51 = vand.u32 65535, %v3227_v21  ;;  %v1216_v21 = vand.u32 65535, %v3249_v34  ;;  %v1126_v34 = vand.u32 65535, %v3267_v53 }
 0x4a4   : > { %v1093_v28 = vsel %vm1077_vm5, %v2652_v7, 8  ;;  %1325 = vmin.xlane.f32.xlu1 %v3343_v19  ;;  %v3348_v36 = vcvt.s32.f32 %v1187_v60  ;;  %v1231_v60 = vand.u32 65535, %v3230_v23  ;;  %v1263_v38 = vcvt.s32.f32 %v1261_v61 }
 0x4a5   : > { %v3351_v59 = vsel %vm452_vm1, %v1093_v28, 2147483647 }
 0x4a6   : > { %v1307_v39 = vshra.s32 %v3351_v59, 16  ;;  %1190 = vmin.xlane.f32.xlu0 %v3348_v36  ;;  %v1233_v43 = vcvt.s32.f32 %v1231_v60 }
 0x4a8   : > { %v3355_v20 = vcvt.s32.f32 %v1307_v39  ;;  %v1098_v39 = vcvt.s32.f32 %v1096_v51 }
 0x4aa   : > { %1310 = vmin.xlane.f32.xlu0 %v3355_v20 }
 0x513   : > { %v3360_v45 = vpop.xlane.xlu1 %1115 }
 0x514   : > { %vm1117_vm6 = vcmp.eq.f32.partialorder %v3223_v63, %v3360_v45 }
 0x515   : > { %v1118_v54 = vsel %vm1117_vm6, %v1113_v40, inf }
 0x516   : > { %1119 = vmin.xlane.f32.xlu1 %v1118_v54 }
 0x517   : > { %v3365_v28 = vpop.xlane.xlu0 %1100 }
 0x518   : > { %v3368_v16 = vpop.xlane.xlu1 %1235  ;;  %vm1102_vm7 = vcmp.eq.f32.partialorder %v3236_v31, %v3365_v28  ;;  %v1218_v31 = vcvt.s32.f32 %v1216_v21  ;;  %v1107_v35 = vcvt.f32.s32 %v3365_v28 }
 0x519   : > { %vm1237_vm8 = vcmp.eq.f32.partialorder %v3240_v41, %v3368_v16  ;;  %v1103_v23 = vsel %vm1102_vm7, %v1098_v39, inf }
 0x51a   : > { %v1238_v63 = vsel %vm1237_vm8, %v1233_v43, inf  ;;  %1104 = vmin.xlane.f32.xlu0 %v1103_v23  ;;  %v1128_v43 = vcvt.s32.f32 %v1126_v34  ;;  %v1173_v23 = vcvt.s32.f32 %v1171_v11  ;;  %v1201_v34 = vand.u32 65535, %v3313_v1 }
 0x51b   : > { %1239 = vmin.xlane.f32.xlu1 %v1238_v63  ;;  %v3380_v40 = vpop.xlane.xlu0 %1220  ;;  %v1291_v63 = vand.u32 65535, %v3298_v5 }
 0x51c   : > { %v3376_v51 = vpop.xlane.xlu1 %1145  ;;  %vm1222_vm10 = vcmp.eq.f32.partialorder %v3261_v56, %v3380_v40 }
 0x51d   : > { %vm1147_vm9 = vcmp.eq.f32.partialorder %v3255_v2, %v3376_v51  ;;  %v1223_v60 = vsel %vm1222_vm10, %v1218_v31, inf  ;;  %v1246_v2 = vand.u32 65535, %v3285_v33  ;;  %v1156_v31 = vand.u32 65535, %v3306_v24 }
 0x51e   : > { %v1148_v41 = vsel %vm1147_vm9, %v1143_v12, inf  ;;  %1224 = vmin.xlane.f32.xlu0 %v1223_v60  ;;  %v1293_v12 = vcvt.s32.f32 %v1291_v63  ;;  %v1321_v60 = vand.u32 65535, %v3330_v10  ;;  %v1203_v24 = vcvt.s32.f32 %v1201_v34  ;;  %v4083_v34 = vld [vmem:[#allocation5_spill] sm:$0xff] }
 0x51f   : > { %1149 = vmin.xlane.f32.xlu1 %v1148_v41  ;;  %v1158_v5 = vcvt.s32.f32 %v1156_v31  ;;  %v1592_v63 = vmax.f32 %v2600_v17, 1.1920929e-07  ;;  %v1593_v31 = vmax.f32 %v2590_v6, 1.1920929e-07 }
 0x520   : > { %v3385_v54 = vpop.xlane.xlu1 %1265  ;;  %v3391_v39 = vpop.xlane.xlu0 %1130 }
 0x521   : > { %vm1267_vm11 = vcmp.eq.f32.partialorder %v3272_v14, %v3385_v54  ;;  %vm1132_vm12 = vcmp.eq.f32.partialorder %v3281_v30, %v3391_v39  ;;  %v1248_v14 = vcvt.s32.f32 %v1246_v2 }
 0x522   : > { %v1268_v53 = vsel %vm1267_vm11, %v1263_v38, inf  ;;  %v1133_v56 = vsel %vm1132_vm12, %v1128_v43, inf }
 0x523   : > { %1269 = vmin.xlane.f32.xlu1 %v1268_v53  ;;  %1134 = vmin.xlane.f32.xlu0 %v1133_v56  ;;  %v1323_v53 = vcvt.s32.f32 %v1321_v60 }
 0x524   : > { %v3395_v21 = vpop.xlane.xlu1 %1175  ;;  %v3399_v42 = vpop.xlane.xlu0 %1250 }
 0x525   : > { %vm1177_vm13 = vcmp.eq.f32.partialorder %v3289_v27, %v3395_v21  ;;  %vm1252_vm14 = vcmp.eq.f32.partialorder %v3291_v50, %v3399_v42  ;;  %v1276_v50 = vand.u32 65535, %v3321_v46 }
 0x526   : > { %v1178_v33 = vsel %vm1177_vm13, %v1173_v23, inf  ;;  %v1253_v30 = vsel %vm1252_vm14, %v1248_v14, inf }
 0x527   : > { %1179 = vmin.xlane.f32.xlu1 %v1178_v33  ;;  %1254 = vmin.xlane.f32.xlu0 %v1253_v30  ;;  %v1278_v2 = vcvt.s32.f32 %v1276_v50  ;;  %v1599_v50 = vmax.f32 %v4083_v34, 1.1920929e-07 }
 0x529   : > { %v3404_v61 = vpop.xlane.xlu1 %1295 }
 0x52a   : > { %vm1297_vm15 = vcmp.eq.f32.partialorder %v3302_v13, %v3404_v61  ;;  %v3411_v41 = vpop.xlane.xlu0 %1160  ;;  %v1186_v13 = vand.u32 65535, %v3339_v9 }
 0x52b   : > { %v1298_v27 = vsel %vm1297_vm15, %v1293_v12, inf  ;;  %vm1162_vm0 = vcmp.eq.f32.partialorder %v3318_v32, %v3411_v41 }
 0x52c   : > { %1299 = vmin.xlane.f32.xlu1 %v1298_v27  ;;  %v1163_v38 = vsel %vm1162_vm0, %v1158_v5, inf  ;;  %v1188_v56 = vcvt.s32.f32 %v1186_v13  ;;  %v1594_v27 = vmax.f32 %v2620_v58, 1.1920929e-07  ;;  %v4084_v5 = vld [vmem:[#allocation8_spill] sm:$0xff] }
 0x52d   : > { %v3416_v11 = vpop.xlane.xlu1 %1205  ;;  %1164 = vmin.xlane.f32.xlu0 %v1163_v38  ;;  %v1595_v60 = vmax.f32 %v4084_v5, 1.1920929e-07 }
 0x52e   : > { %vm1207_vm2 = vcmp.eq.f32.partialorder %v3327_v8, %v3416_v11  ;;  %v1306_v8 = vand.u32 65535, %v3351_v59  ;;  %v1591_v59 = vmax.f32 %v2572_v55, 1.1920929e-07  ;;  %v1610_v38 = vmin.f32 %v1594_v27, 0.9999999 }
 0x52f   : > { %v3421_v1 = vpop.xlane.xlu0 %1280  ;;  %v1208_v46 = vsel %vm1207_vm2, %v1203_v24, inf  ;;  %v4085_v24 = vld [vmem:[#allocation14_spill] sm:$0xff] }
 0x530   : > { %vm1282_vm3 = vcmp.eq.f32.partialorder %v3336_v57, %v3421_v1  ;;  %1209 = vmin.xlane.f32.xlu1 %v1208_v46  ;;  %v1308_v14 = vcvt.s32.f32 %v1306_v8  ;;  %v1607_v12 = vmin.f32 %v1591_v59, 0.9999999  ;;  %v1596_v13 = vmax.f32 %v4085_v24, 1.1920929e-07 }
 0x531   : > { %v1283_v32 = vsel %vm1282_vm3, %v1278_v2, inf  ;;  %v3425_v10 = vpop.xlane.xlu1 %1325  ;;  %v1615_v46 = vmin.f32 %v1599_v50, 0.9999999  ;;  %v4086_v2 = vld [vmem:[#allocation6_spill] sm:$0xff] }
 0x532   : > { %1284 = vmin.xlane.f32.xlu0 %v1283_v32  ;;  %vm1327_vm4 = vcmp.eq.f32.partialorder %v3343_v19, %v3425_v10  ;;  %v1590_v19 = vmax.f32 %v2577_v62, 1.1920929e-07  ;;  %v1598_v32 = vmax.f32 %v4086_v2, 1.1920929e-07 }
 0x533   : > { %v3430_v43 = vpop.xlane.xlu0 %1190  ;;  %v1328_v9 = vsel %vm1327_vm4, %v1323_v53, inf  ;;  %v1611_v53 = vmin.f32 %v1595_v60, 0.9999999 }
 0x534   : > { %vm1192_vm5 = vcmp.eq.f32.partialorder %v3348_v36, %v3430_v43  ;;  %1329 = vmin.xlane.f32.xlu1 %v1328_v9  ;;  %v1606_v30 = vmin.f32 %v1590_v19, 0.9999999  ;;  %v1608_v36 = vmin.f32 %v1592_v63, 0.9999999  ;;  %v1612_v9 = vmin.f32 %v1596_v13, 0.9999999 }
 0x535   : > { %v1193_v57 = vsel %vm1192_vm5, %v1188_v56, inf  ;;  %v1614_v56 = vmin.f32 %v1598_v32, 0.9999999  ;;  %v1553_v63 = vsel %vm452_vm1, %v2577_v62, 0.0  ;;  %v4089_v13 = vld [vmem:[#allocation9_spill] sm:$0xff] }
 0x536   : > { %1194 = vmin.xlane.f32.xlu0 %v1193_v57  ;;  %2191 = vlog2.f32 %v1606_v30  ;;  %v4088_v30 = vld [vmem:[#allocation11_spill] sm:$0xff] }
 0x537   : > { %v3434_v23 = vpop.xlane.xlu0 %1310  ;;  %2193 = vlog2.f32 %v1607_v12  ;;  %v1597_v12 = vmax.f32 %v4088_v30, 1.1920929e-07  ;;  %v1566_v28 = vsel %vm452_vm1, %v4088_v30, 0.0 }
 0x538   : > { %vm1312_vm6 = vcmp.eq.f32.partialorder %v3355_v20, %v3434_v23  ;;  %2195 = vlog2.f32 %v1608_v36  ;;  %v1609_v20 = vmin.f32 %v1593_v31, 0.9999999  ;;  %v1554_v36 = vsel %vm452_vm1, %v2572_v55, 0.0 }
 0x539   : > { %v1313_v33 = vsel %vm1312_vm6, %v1308_v14, inf  ;;  %v4087_v14 = vld [vmem:[#allocation7_spill] sm:$0xff]  ;;  %v1556_v31 = vsel %vm452_vm1, %v2600_v17, 0.0  ;;  %v1555_v60 = vadd.f32 %v1554_v36, %v1553_v63 }
 0x53a   : > { %1314 = vmin.xlane.f32.xlu0 %v1313_v33  ;;  %2197 = vlog2.f32 %v1609_v20  ;;  %v1601_v33 = vmax.f32 %v4087_v14, 1.1920929e-07 }
 0x53b   : > { %2199 = vlog2.f32 %v1610_v38  ;;  %v1557_v47 = vadd.f32 %v1556_v31, %v1555_v60 }
 0x53c   : > { %2201 = vlog2.f32 %v1615_v46  ;;  %v1617_v50 = vmin.f32 %v1601_v33, 0.9999999  ;;  %v1600_v46 = vmax.f32 %v4089_v13, 1.1920929e-07 }
 0x53d   : > { %2203 = vlog2.f32 %v1611_v53  ;;  %v1613_v53 = vmin.f32 %v1597_v12, 0.9999999 }
 0x53e   : > { %2205 = vlog2.f32 %v1612_v9  ;;  %v1616_v33 = vmin.f32 %v1600_v46, 0.9999999 }
 0x53f   : > { %2207 = vlog2.f32 %v1614_v56 }
 0x540   : > { %v2192_v8 = vpop.eup %2191  ;;  %2209 = vlog2.f32 %v1617_v50 }
 0x541   : > { %v2194_v57 = vpop.eup %2193  ;;  %v1623_v59 = vmul.f32 0.6931472, %v2192_v8  ;;  %2211 = vlog2.f32 %v1613_v53  ;;  %v4091_v53 = vld [vmem:[#allocation12_spill] sm:$0xff] }
 0x542   : > { %v2196_v19 = vpop.eup %2195  ;;  %v1625_v27 = vmul.f32 0.6931472, %v2194_v57  ;;  %v1558_v57 = vsel %vm452_vm1, %v2590_v6, 0.0  ;;  %2213 = vlog2.f32 %v1616_v33  ;;  %v1602_v25 = vmax.f32 %v4091_v53, 1.1920929e-07 }
 0x543   : > { %v1627_v20 = vmul.f32 0.6931472, %v2196_v19  ;;  %v1654_v38 = vmul.f32 %v1623_v59, %v2577_v62  ;;  %v1560_v59 = vsel %vm452_vm1, %v2620_v58, 0.0  ;;  %v1559_v36 = vadd.f32 %v1558_v57, %v1557_v47 }
 0x544   : > { %v2198_v32 = vpop.eup %2197  ;;  %v1655_v9 = vmul.f32 %v1625_v27, %v2572_v55  ;;  %v1122_v33 = vcvt.f32.s32 %v3360_v45 }
 0x545   : > { %v2200_v8 = vpop.eup %2199  ;;  %v1656_v56 = vmul.f32 %v1627_v20, %v2600_v17  ;;  %v1670_v15 = vsel %vm452_vm1, %v1654_v38, 0.0  ;;  %v1629_v19 = vmul.f32 0.6931472, %v2198_v32  ;;  %v1561_v46 = vadd.f32 %v1560_v59, %v1559_v36 }
 0x546   : > { %v2202_v44 = vpop.eup %2201  ;;  %v1631_v63 = vmul.f32 0.6931472, %v2200_v8  ;;  %v1671_v27 = vsel %vm452_vm1, %v1655_v9, 0.0  ;;  %v1562_v9 = vsel %vm452_vm1, %v4084_v5, 0.0  ;;  %v1568_v59 = vsel %vm452_vm1, %v4086_v2, 0.0 }
 0x547   : > { %v2204_v12 = vpop.eup %2203  ;;  %v1641_v50 = vmul.f32 0.6931472, %v2202_v44  ;;  %v1673_v20 = vsel %vm452_vm1, %v1656_v56, 0.0  ;;  %v1672_v38 = vadd.f32 %v1671_v27, %v1670_v15  ;;  %v1657_v32 = vmul.f32 %v1629_v19, %v2590_v6 }
 0x548   : > { %v2206_v31 = vpop.eup %2205  ;;  %v1633_v29 = vmul.f32 0.6931472, %v2204_v12  ;;  %v1658_v8 = vmul.f32 %v1631_v63, %v2620_v58  ;;  %v1564_v15 = vsel %vm452_vm1, %v4085_v24, 0.0  ;;  %v3478_v19 = vsel %vm452_vm1, %v4083_v34, 0.0 }
 0x549   : > { %v2208_v60 = vpop.eup %2207  ;;  %v1674_v47 = vadd.f32 %v1673_v20, %v1672_v38  ;;  %v1635_v44 = vmul.f32 0.6931472, %v2206_v31  ;;  %v1663_v56 = vmul.f32 %v1641_v50, %v4083_v34  ;;  %v1619_v63 = vmin.f32 %v1603_v3, 0.9999999 }
 0x54a   : > { %v1639_v57 = vmul.f32 0.6931472, %v2208_v60  ;;  %v1563_v12 = vadd.f32 %v1562_v9, %v1561_v46  ;;  %v2210_v36 = vpop.eup %2209  ;;  %v1675_v31 = vsel %vm452_vm1, %v1657_v32, 0.0  ;;  %v1659_v27 = vmul.f32 %v1633_v29, %v4084_v5 }
 0x54b   : > { %v1677_v50 = vsel %vm452_vm1, %v1658_v8, 0.0  ;;  %v1618_v20 = vmin.f32 %v1602_v25, 0.9999999  ;;  %v1676_v60 = vadd.f32 %v1675_v31, %v1674_v47  ;;  %v1660_v45 = vmul.f32 %v1635_v44, %v4085_v24  ;;  %v2212_v22 = vpop.eup %2211 }
 0x54c   : > { %v1565_v38 = vadd.f32 %v1564_v15, %v1563_v12  ;;  %v3488_v48 = vsel %vm452_vm1, %v1663_v56, 0.0  ;;  %v3491_v3 = vmul.f32 %v1639_v57, %v4086_v2  ;;  %v1123_v46 = vshll.u32 %v1122_v33, 16  ;;  %v2214_v44 = vpop.eup %2213 }
 0x54d   : > { %v3493_v29 = vmul.f32 0.6931472, %v2210_v36  ;;  %2215 = vlog2.f32 %v1619_v63  ;;  %v1678_v25 = vadd.f32 %v1677_v50, %v1676_v60  ;;  %v1242_v8 = vcvt.f32.s32 %v3368_v16 }
 0x54e   : > { %v1679_v47 = vsel %vm452_vm1, %v1659_v27, 0.0  ;;  %2217 = vlog2.f32 %v1618_v20  ;;  %v1637_v56 = vmul.f32 0.6931472, %v2212_v22  ;;  %v1567_v57 = vadd.f32 %v1566_v28, %v1565_v38 }
 0x54f   : > { %v1681_v15 = vsel %vm452_vm1, %v1660_v45, 0.0  ;;  %v1152_v63 = vcvt.f32.s32 %v3376_v51  ;;  %v1227_v12 = vcvt.f32.s32 %v3380_v40  ;;  %v1680_v31 = vadd.f32 %v1679_v47, %v1678_v25 }
 0x550   : > { %v1243_v27 = vshll.u32 %v1242_v8, 16  ;;  %v1643_v20 = vmul.f32 0.6931472, %v2214_v44  ;;  %v1661_v40 = vmul.f32 %v1637_v56, %v4088_v30  ;;  %v1272_v47 = vcvt.f32.s32 %v3385_v54 }
 0x551   : > { %v1682_v45 = vadd.f32 %v1681_v15, %v1680_v31  ;;  %v1153_v25 = vshll.u32 %v1152_v63, 16  ;;  %v1228_v8 = vshll.u32 %v1227_v12, 16 }
 0x552   : > { %v1683_v12 = vsel %vm452_vm1, %v1661_v40, 0.0 }
 0x553   : > { %v1684_v31 = vadd.f32 %v1683_v12, %v1682_v45  ;;  %v4094_v12 = vld [vmem:[#allocation13_spill] sm:$0xff] }
 0x557   : > { %v3533_v63 = vpop.eup %2215 }
 0x5a3   : > { %v1120_v49 = vpop.xlane.xlu1 %1119 }
 0x5a4   : > { %v1121_v32 = vcvt.f32.s32 %v1120_v49  ;;  %v1108_v49 = vshll.u32 %v1107_v35, 16  ;;  %v4092_v35 = vld [vmem:[#allocation15_spill] sm:$0xff] }
 0x5a5   : > { %v1604_v60 = vmax.f32 %v4092_v35, 1.1920929e-07 }
 0x5a6   : > { %v3499_v9 = vadd.s32 %v1123_v46, %v1121_v32  ;;  %v1569_v32 = vadd.f32 %v1568_v59, %v1567_v57  ;;  %v1137_v57 = vcvt.f32.s32 %v3391_v39  ;;  %v2218_v39 = vpop.eup %2217 }
 0x5a7   : > { %v1105_v33 = vpop.xlane.xlu0 %1104 }
 0x5a8   : > { %v1240_v16 = vpop.xlane.xlu1 %1239  ;;  %v1106_v36 = vcvt.f32.s32 %v1105_v33  ;;  %vm1336_vm7 = vcmp.eq.s32.totalorder %v2652_v7, %v3499_v9 }
 0x5a9   : > { %v1241_v50 = vcvt.f32.s32 %v1240_v16  ;;  %v1352_v22 = vsel %vm1336_vm7, %v2572_v55, 0.0  ;;  %v4093_v55 = vmov 0.0  }
 0x5aa   : > { %v3511_v38 = vadd.s32 %v1108_v49, %v1106_v36  ;;  %v1370_v51 = vsel %vm452_vm1, %v1352_v22, 0.0  ;;  %v1980_v44 = vsel %vm1336_vm7, 1.0, %v4093_v55 }
 0x5ab   : > { %v3515_v46 = vadd.s32 %v1243_v27, %v1241_v50  ;;  %1371 = vadd.xlane.f32.xlu1 %v1370_v51  ;;  %v1225_v56 = vpop.xlane.xlu0 %1224  ;;  %v1517_v27 = vsel %vm452_vm1, %v1980_v44, 0.0  ;;  %v1273_v51 = vshll.u32 %v1272_v47, 16 }
 0x5ac   : > { %v1150_v28 = vpop.xlane.xlu1 %1149  ;;  %vm1335_vm8 = vcmp.eq.s32.totalorder %v2652_v7, %v3511_v38  ;;  %v1226_v15 = vcvt.f32.s32 %v1225_v56 }
 0x5ad   : > { %v1151_v49 = vcvt.f32.s32 %v1150_v28  ;;  %vm1344_vm9 = vcmp.eq.s32.totalorder %v2652_v7, %v3515_v46  ;;  %v1351_v59 = vsel %vm1335_vm8, %v2577_v62, 0.0  ;;  %v1979_v62 = vsel %vm1335_vm8, 1.0, %v4093_v55 }
 0x5ae   : > { %v1360_v54 = vsel %vm1344_vm9, %v4083_v34, 0.0  ;;  %v1367_v33 = vsel %vm452_vm1, %v1351_v59, 0.0  ;;  %v3541_v50 = vadd.s32 %v1228_v8, %v1226_v15  ;;  %v1516_v22 = vsel %vm452_vm1, %v1979_v62, 0.0 }
 0x5af   : > { %v3536_v16 = vadd.s32 %v1153_v25, %v1151_v49  ;;  %v1394_v36 = vsel %vm452_vm1, %v1360_v54, 0.0  ;;  %1368 = vadd.xlane.f32.xlu0 %v1367_v33  ;;  %v1518_v40 = vadd.f32 %v1517_v27, %v1516_v22  ;;  %v1138_v25 = vshll.u32 %v1137_v57, 16 }
 0x5b0   : > { %1395 = vadd.xlane.f32.xlu1 %v1394_v36  ;;  %v1270_v34 = vpop.xlane.xlu1 %1269  ;;  %v1182_v49 = vcvt.f32.s32 %v3395_v21  ;;  %v1135_v56 = vpop.xlane.xlu0 %1134  ;;  %vm1343_vm11 = vcmp.eq.s32.totalorder %v2652_v7, %v3541_v50  ;;  %v1257_v8 = vcvt.f32.s32 %v3399_v42  ;;  %v1685_v57 = vsel %vm452_vm1, %v3491_v3, 0.0 }
 0x5b1   : > { %v1271_v28 = vcvt.f32.s32 %v1270_v34  ;;  %vm1338_vm10 = vcmp.eq.s32.totalorder %v2652_v7, %v3536_v16  ;;  %v1136_v44 = vcvt.f32.s32 %v1135_v56  ;;  %v1665_v21 = vmul.f32 %v3493_v29, %v4087_v14 }
 0x5b2   : > { %v1354_v45 = vsel %vm1338_vm10, %v2590_v6, 0.0  ;;  %v1664_v15 = vmul.f32 %v1643_v20, %v4089_v13  ;;  %v1359_v6 = vsel %vm1343_vm11, %v4086_v2, 0.0  ;;  %v1605_v36 = vmax.f32 %v4094_v12, 1.1920929e-07 }
 0x5b3   : > { %v3554_v47 = vadd.s32 %v1273_v51, %v1271_v28  ;;  %v1376_v59 = vsel %vm452_vm1, %v1354_v45, 0.0  ;;  %v3566_v42 = vadd.s32 %v1138_v25, %v1136_v44  ;;  %v1391_v33 = vsel %vm452_vm1, %v1359_v6, 0.0 }
 0x5b4   : > { %1377 = vadd.xlane.f32.xlu1 %v1376_v59  ;;  %v1180_v54 = vpop.xlane.xlu1 %1179  ;;  %v1620_v62 = vmin.f32 %v1604_v60, 0.9999999  ;;  %v1183_v3 = vshll.u32 %v1182_v49, 16  ;;  %1392 = vadd.xlane.f32.xlu0 %v1391_v33  ;;  %v1255_v29 = vpop.xlane.xlu0 %1254  ;;  %v1571_v20 = vadd.f32 %v3478_v19, %v1569_v32  ;;  %v1258_v34 = vshll.u32 %v1257_v8, 16 }
 0x5b5   : > { %v1181_v27 = vcvt.f32.s32 %v1180_v54  ;;  %vm1346_vm12 = vcmp.eq.s32.totalorder %v2652_v7, %v3554_v47  ;;  %v1256_v22 = vcvt.f32.s32 %v1255_v29  ;;  %v1686_v51 = vadd.f32 %v1685_v57, %v1684_v31 }
 0x5b6   : > { %v1362_v2 = vsel %vm1346_vm12, %v4087_v14, 0.0  ;;  %v1302_v28 = vcvt.f32.s32 %v3404_v61  ;;  %vm1337_vm13 = vcmp.eq.s32.totalorder %v2652_v7, %v3566_v42  ;;  %v1982_v19 = vsel %vm1338_vm10, 1.0, %v4093_v55 }
 0x5b7   : > { %v3578_v60 = vadd.s32 %v1183_v3, %v1181_v27  ;;  %v1400_v25 = vsel %vm452_vm1, %v1362_v2, 0.0  ;;  %v3587_v32 = vadd.s32 %v1258_v34, %v1256_v22  ;;  %v1353_v49 = vsel %vm1337_vm13, %v2600_v17, 0.0 }
 0x5b8   : > { %1401 = vadd.xlane.f32.xlu1 %v1400_v25  ;;  %v1981_v31 = vsel %vm1337_vm13, 1.0, %v4093_v55  ;;  %v1373_v61 = vsel %vm452_vm1, %v1353_v49, 0.0  ;;  %2219 = vlog2.f32 %v1620_v62  ;;  %v1621_v44 = vmin.f32 %v1605_v36, 0.9999999 }
 0x5b9   : > { %v1519_v56 = vsel %vm452_vm1, %v1981_v31, 0.0  ;;  %vm1340_vm14 = vcmp.eq.s32.totalorder %v2652_v7, %v3578_v60  ;;  %1374 = vadd.xlane.f32.xlu0 %v1373_v61  ;;  %v1688_v17 = vadd.f32 %v3488_v48, %v1686_v51  ;;  %v1521_v59 = vsel %vm452_vm1, %v1982_v19, 0.0  ;;  %v1300_v57 = vpop.xlane.xlu1 %1299 }
 0x5ba   : > { %v1520_v45 = vadd.f32 %v1519_v56, %v1518_v40  ;;  %v1356_v8 = vsel %vm1340_vm14, %v4084_v5, 0.0  ;;  %vm1345_vm15 = vcmp.eq.s32.totalorder %v2652_v7, %v3587_v32  ;;  %v1647_v54 = vmul.f32 0.6931472, %v2218_v39 }
 0x5bb   : > { %v1382_v6 = vsel %vm452_vm1, %v1356_v8, 0.0  ;;  %v1303_v33 = vshll.u32 %v1302_v28, 16  ;;  %v1301_v40 = vcvt.f32.s32 %v1300_v57  ;;  %v1361_v5 = vsel %vm1345_vm15, %v4089_v13, 0.0 }
 0x5bc   : > { %1383 = vadd.xlane.f32.xlu1 %v1382_v6  ;;  %v1522_v36 = vadd.f32 %v1521_v59, %v1520_v45  ;;  %v1167_v48 = vcvt.f32.s32 %v3411_v41  ;;  %v1397_v62 = vsel %vm452_vm1, %v1361_v5, 0.0  ;;  %v1689_v3 = vsel %vm452_vm1, %v1664_v15, 0.0  ;;  %v1165_v41 = vpop.xlane.xlu0 %1164 }
 0x5bd   : > { %v3611_v27 = vadd.s32 %v1303_v33, %v1301_v40  ;;  %1398 = vadd.xlane.f32.xlu0 %v1397_v62  ;;  %2221 = vlog2.f32 %v1621_v44  ;;  %v1690_v39 = vadd.f32 %v1689_v3, %v1688_v17  ;;  %v1572_v29 = vsel %vm452_vm1, %v4089_v13, 0.0 }
 0x5be   : > { %v1212_v34 = vcvt.f32.s32 %v3416_v11  ;;  %v1574_v22 = vsel %vm452_vm1, %v4087_v14, 0.0  ;;  %v1649_v2 = vmul.f32 0.6931472, %v3533_v63  ;;  %v1573_v15 = vadd.f32 %v1572_v29, %v1571_v20  ;;  %v1210_v14 = vpop.xlane.xlu1 %1209 }
 0x5bf   : > { %vm1348_vm0 = vcmp.eq.s32.totalorder %v2652_v7, %v3611_v27  ;;  %v1666_v51 = vmul.f32 %v1647_v54, %v4091_v53  ;;  %v1691_v28 = vsel %vm452_vm1, %v1665_v21, 0.0  ;;  %v1168_v25 = vshll.u32 %v1167_v48, 16 }
 0x5c0   : > { %v1287_v19 = vcvt.f32.s32 %v3421_v1  ;;  %v1166_v13 = vcvt.f32.s32 %v1165_v41  ;;  %v1364_v11 = vsel %vm1348_vm0, %v4090_v37, 0.0  ;;  %v1576_v49 = vsel %vm452_vm1, %v4091_v53, 0.0  ;;  %v1285_v44 = vpop.xlane.xlu0 %1284 }
 0x5c1   : > { %v1406_v63 = vsel %vm452_vm1, %v1364_v11, 0.0  ;;  %v1578_v20 = vsel %vm452_vm1, %v4090_v37, 0.0  ;;  %v1692_v31 = vadd.f32 %v1691_v28, %v1690_v39  ;;  %v1213_v61 = vshll.u32 %v1212_v34, 16 }
 0x5c2   : > { %v2220_v21 = vpop.eup %2219  ;;  %v1332_v1 = vcvt.f32.s32 %v3425_v10  ;;  %v3634_v56 = vadd.s32 %v1168_v25, %v1166_v13  ;;  %v1211_v45 = vcvt.f32.s32 %v1210_v14  ;;  %1407 = vadd.xlane.f32.xlu1 %v1406_v63  ;;  %v1197_v8 = vcvt.f32.s32 %v3430_v43  ;;  %v1330_v10 = vpop.xlane.xlu1 %1329 }
 0x5c3   : > { %v1575_v17 = vadd.f32 %v1574_v22, %v1573_v15  ;;  %v1667_v59 = vmul.f32 %v1649_v2, %v4090_v37  ;;  %v1693_v57 = vsel %vm452_vm1, %v1666_v51, 0.0  ;;  %v1288_v6 = vshll.u32 %v1287_v19, 16 }
 0x5c4   : > { %v3639_v54 = vadd.s32 %v1213_v61, %v1211_v45  ;;  %v1286_v33 = vcvt.f32.s32 %v1285_v44  ;;  %vm1339_vm2 = vcmp.eq.s32.totalorder %v2652_v7, %v3634_v56  ;;  %v1651_v48 = vmul.f32 0.6931472, %v2220_v21 }
 0x5c5   : > { %v1355_v40 = vsel %vm1339_vm2, %v2620_v58, 0.0  ;;  %v1983_v5 = vsel %vm1339_vm2, 1.0, %v4093_v55  ;;  %v1694_v43 = vadd.f32 %v1693_v57, %v1692_v31  ;;  %v1333_v62 = vshll.u32 %v1332_v1, 16  ;;  %v1195_v58 = vpop.xlane.xlu0 %1194 }
 0x5c6   : > { %v3645_v3 = vadd.s32 %v1288_v6, %v1286_v33  ;;  %v1331_v37 = vcvt.f32.s32 %v1330_v10  ;;  %v1379_v39 = vsel %vm452_vm1, %v1355_v40, 0.0  ;;  %v1198_v34 = vshll.u32 %v1197_v8, 16 }
 0x5c7   : > { %v2222_v29 = vpop.eup %2221  ;;  %v1984_v22 = vsel %vm1340_vm14, 1.0, %v4093_v55  ;;  %v1523_v2 = vsel %vm452_vm1, %v1983_v5, 0.0  ;;  %1380 = vadd.xlane.f32.xlu0 %v1379_v39  ;;  %vm1342_vm3 = vcmp.eq.s32.totalorder %v2652_v7, %v3639_v54  ;;  %v1317_v41 = vcvt.f32.s32 %v3434_v23 }
 0x5c8   : > { %v3656_v15 = vadd.s32 %v1333_v62, %v1331_v37  ;;  %v1524_v51 = vadd.f32 %v1523_v2, %v1522_v36  ;;  %v1196_v28 = vcvt.f32.s32 %v1195_v58  ;;  %v1358_v25 = vsel %vm1342_vm3, %v4088_v30, 0.0 }
 0x5c9   : > { %vm1347_vm4 = vcmp.eq.s32.totalorder %v2652_v7, %v3645_v3  ;;  %v1577_v19 = vadd.f32 %v1576_v49, %v1575_v17  ;;  %v1695_v13 = vsel %vm452_vm1, %v1667_v59, 0.0  ;;  %v1525_v11 = vsel %vm452_vm1, %v1984_v22, 0.0  ;;  %v1315_v30 = vpop.xlane.xlu0 %1314 }
 0x5ca   : > { %v3666_v14 = vadd.s32 %v1198_v34, %v1196_v28  ;;  %v1388_v23 = vsel %vm452_vm1, %v1358_v25, 0.0  ;;  %v1653_v63 = vmul.f32 0.6931472, %v2222_v29  ;;  %v1363_v36 = vsel %vm1347_vm4, %v4091_v53, 0.0 }
 0x5cb   : > { %1389 = vadd.xlane.f32.xlu1 %v1388_v23  ;;  %vm1350_vm5 = vcmp.eq.s32.totalorder %v2652_v7, %v3656_v15  ;;  %v1526_v49 = vadd.f32 %v1525_v11, %v1524_v51  ;;  %v1668_v31 = vmul.f32 %v1651_v48, %v4092_v35  ;;  %v1318_v21 = vshll.u32 %v1317_v41, 16 }
 0x5cc   : > { %v1403_v61 = vsel %vm452_vm1, %v1363_v36, 0.0  ;;  %v1316_v1 = vcvt.f32.s32 %v1315_v30  ;;  %v1696_v45 = vadd.f32 %v1695_v13, %v1694_v43  ;;  %v1366_v8 = vsel %vm1350_vm5, %v4094_v12, 0.0 }
 0x5cd   : > { %1404 = vadd.xlane.f32.xlu0 %v1403_v61  ;;  %vm1341_vm6 = vcmp.eq.s32.totalorder %v2652_v7, %v3666_v14  ;;  %v1579_v53 = vadd.f32 %v1578_v20, %v1577_v19  ;;  %v1412_v17 = vsel %vm452_vm1, %v1366_v8, 0.0  ;;  %v1669_v57 = vmul.f32 %v1653_v63, %v4094_v12 }
 0x5ce   : > { %v3683_v44 = vadd.s32 %v1318_v21, %v1316_v1  ;;  %v1357_v59 = vsel %vm1341_vm6, %v4085_v24, 0.0  ;;  %v1986_v6 = vsel %vm1342_vm3, 1.0, %v4093_v55  ;;  %v1985_v10 = vsel %vm1341_vm6, 1.0, %v4093_v55 }
 0x5cf   : > { %1413 = vadd.xlane.f32.xlu1 %v1412_v17  ;;  %v1385_v33 = vsel %vm452_vm1, %v1357_v59, 0.0  ;;  %v1697_v20 = vsel %vm452_vm1, %v1668_v31, 0.0  ;;  %v1527_v40 = vsel %vm452_vm1, %v1985_v10, 0.0  ;;  %v1987_v5 = vsel %vm1343_vm11, 1.0, %v4093_v55 }
 0x5d0   : > { %vm1349_vm7 = vcmp.eq.s32.totalorder %v2652_v7, %v3683_v44  ;;  %v1698_v24 = vadd.f32 %v1697_v20, %v1696_v45  ;;  %v1528_v48 = vadd.f32 %v1527_v40, %v1526_v49  ;;  %v1580_v62 = vsel %vm452_vm1, %v4092_v35, 0.0 }
 0x5d1   : > { %1386 = vadd.xlane.f32.xlu0 %v1385_v33  ;;  %v1365_v43 = vsel %vm1349_vm7, %v4092_v35, 0.0  ;;  %v1529_v37 = vsel %vm452_vm1, %v1986_v6, 0.0  ;;  %v1581_v29 = vadd.f32 %v1580_v62, %v1579_v53  ;;  %v1988_v34 = vsel %vm1344_vm9, 1.0, %v4093_v55 }
 0x5d2   : > { %v1409_v39 = vsel %vm452_vm1, %v1365_v43, 0.0  ;;  %v1530_v22 = vadd.f32 %v1529_v37, %v1528_v48  ;;  %v1699_v2 = vsel %vm452_vm1, %v1669_v57, 0.0  ;;  %v1531_v58 = vsel %vm452_vm1, %v1987_v5, 0.0 }
 0x5d3   : > { %v1700_v41 = vadd.f32 %v1699_v2, %v1698_v24  ;;  %v1989_v35 = vsel %vm1345_vm15, 1.0, %v4093_v55  ;;  %v1582_v28 = vsel %vm452_vm1, %v4094_v12, 0.0  ;;  %v1533_v25 = vsel %vm452_vm1, %v1988_v34, 0.0 }
 0x5d4   : > { %v1532_v51 = vadd.f32 %v1531_v58, %v1530_v22  ;;  %v1583_v19 = vadd.f32 %v1582_v28, %v1581_v29  ;;  %v1990_v13 = vsel %vm1346_vm12, 1.0, %v4093_v55  ;;  %v1535_v23 = vsel %vm452_vm1, %v1989_v35, 0.0 }
 0x5d5   : > { %1410 = vadd.xlane.f32.xlu0 %v1409_v39  ;;  %v1701_v63 = vrot.slane %v1700_v41, 4  ;;  %v1991_v36 = vsel %vm1347_vm4, 1.0, %v4093_v55  ;;  %v1537_v12 = vsel %vm452_vm1, %v1990_v13, 0.0  ;;  %v1992_v31 = vsel %vm1348_vm0, 1.0, %v4093_v55 }
 0x5d6   : > { %v1534_v11 = vadd.f32 %v1533_v25, %v1532_v51  ;;  %v1584_v49 = vrot.slane %v1583_v19, 4  ;;  %v1478_v61 = vrot.slane %v3212_v4, 4  ;;  %v1539_v1 = vsel %vm452_vm1, %v1991_v36, 0.0 }
 0x5d7   : > { %v1702_v45 = vadd.f32 %v1701_v63, %v1700_v41  ;;  %v1993_v8 = vsel %vm1349_vm7, 1.0, %v4093_v55  ;;  %v1541_v17 = vsel %vm452_vm1, %v1992_v31, 0.0  ;;  %v1994_v57 = vsel %vm1350_vm5, 1.0, %v4093_v55 }
 0x5d8   : > { %v1536_v30 = vadd.f32 %v1535_v23, %v1534_v11  ;;  %v1585_v59 = vadd.f32 %v1584_v49, %v1583_v19  ;;  %v1479_v33 = vadd.f32 %v1478_v61, %v3212_v4  ;;  %v1543_v10 = vsel %vm452_vm1, %v1993_v8, 0.0 }
 0x5d9   : > { %v1703_v20 = vrot.slane %v1702_v45, 2  ;;  %v1545_v24 = vsel %vm452_vm1, %v1994_v57, 0.0  ;;  %v4095_v2 = vlaneseq  ;;  %vm1815_vm10 = vcmask 60416  }
 0x5da   : > { %v1538_v21 = vadd.f32 %v1537_v12, %v1536_v30  ;;  %v1586_v5 = vrot.slane %v1585_v59, 2  ;;  %v1480_v43 = vrot.slane %v1479_v33, 2 }
 0x5db   : > { %v1704_v62 = vadd.f32 %v1703_v20, %v1702_v45  ;;  %v1808_v4 = vshrl.u32 %v4095_v2, 7 }
 0x5dc   : > { %v1540_v53 = vadd.f32 %v1539_v1, %v1538_v21  ;;  %v1587_v39 = vadd.f32 %v1586_v5, %v1585_v59  ;;  %v1481_v34 = vadd.f32 %v1480_v43, %v1479_v33 }
 0x5dd   : > { %v1705_v55 = vrot.slane %v1704_v62, 1  ;;  %vm1811_vm1 = vcmp.eq.s32.totalorder %v1808_v4, 2  ;;  %vm1810_vm8 = vcmp.eq.s32.totalorder %v1808_v4, 1  ;;  %vm1809_vm9 = vcmp.eq.s32.totalorder %v1808_v4, 0 }
 0x5de   : > { %v1542_v6 = vadd.f32 %v1541_v17, %v1540_v53  ;;  %v1588_v58 = vrot.slane %v1587_v39, 1  ;;  %v1482_v35 = vrot.slane %v1481_v34, 1 }
 0x5df   : > { %v1706_v51 = vadd.f32 %v1705_v55, %v1704_v62 }
 0x5e0   : > { %v1544_v40 = vadd.f32 %v1543_v10, %v1542_v6  ;;  %v1589_v25 = vadd.f32 %v1588_v58, %v1587_v39  ;;  %v1483_v13 = vadd.f32 %v1482_v35, %v1481_v34 }
 0x5e2   : > { %v1546_v48 = vadd.f32 %v1545_v24, %v1544_v40  ;;  %v1812_v11 = vsel %vm1811_vm1, %v1589_v25, %v1706_v51 }
 0x5e4   : > { %v1547_v37 = vrot.slane %v1546_v48, 4 }
 0x5e6   : > { %v1548_v29 = vadd.f32 %v1547_v37, %v1546_v48 }
 0x5e8   : > { %v1549_v22 = vrot.slane %v1548_v29, 2 }
 0x5ea   : > { %v1550_v41 = vadd.f32 %v1549_v22, %v1548_v29 }
 0x5ec   : > { %v1551_v28 = vrot.slane %v1550_v41, 1 }
 0x5ee   : > { %v1552_v19 = vadd.f32 %v1551_v28, %v1550_v41 }
 0x5f0   : > { %v1813_v23 = vsel %vm1810_vm8, %v1552_v19, %v1812_v11 }
 0x5f1   : > { %v1814_v63 = vsel %vm1809_vm9, %v1483_v13, %v1813_v23 }
 0x5f2   : > { %1816 = vst.msk [vmem:[%s215_s11] sm:$0xf] %vm1815_vm10, %v1814_v63 }
 0x5f3   : > { %2236 = shalt.err (!%p2233_p3)
}
 0x5f4   : > { %s2237_s30 = scalar_lea.hbm %s3757_s22, 64  ;;  %s2241_s7 = scalar_lea.hbm %s3988_s4, 128 }
 0x5f5   : > { %p2238_p4 = scmp.ne.s32.totalorder %s3757_s22, %s2237_s30  ;;  %p2242_p9 = scmp.lt.u32.totalorder %s3757_s22, %s3988_s4 }
 0x5f6   : > { %p2243_p10 = scmp.lt.u32.totalorder %s2241_s7, %s2237_s30  ;;  %p2245_p12 = scmp.lt.u32.totalorder %s2237_s30, %s3757_s22 }
 0x5f7   : > { %p2239_p7 = pnand %p2238_p4, %p2352_p5 }
 0x5f8   : > { %p2244_p11 = por %p2243_p10, %p2242_p9 }
 0x5f9   : > { %p2240_p8 = pneg %p2239_p7 }
 0x5fa   : > { %p2246_p13 = por %p2245_p12, %p2244_p11 }
 0x5fc   : > { %p2247_p0 = pnand %p2246_p13, %p2240_p8 }
 0x5fe   : > { %2250 = shalt.err (!%p2247_p0)
}
 0x5ff   : > { %2087 = dma.vmem_to_hbm [thread:$0]  (%p2352_p5), %s3759_s12, 64, %s3757_s22, %s1823_s19   ;;  %vm1741_vm11 = vcmp.eq.s32.totalorder %v2652_v7, 2  ;;  %vm1724_vm12 = vcmp.eq.s32.totalorder %v2652_v7, 1  ;;  %v1726_v36 = vcvt.s32.f32 %v3499_v9  ;;  %vm1707_vm13 = vcmp.eq.s32.totalorder %v2652_v7, 0  ;;  %v4096_v49 = vld [vmem:[#allocation16_spill] sm:$0xff]  ;;  %v4097_v53 = vld [vmem:[#allocation17_spill] sm:$0xff] }
 0x600   : > { %s3790_s13 = scalar_lea.vmem %s3987_s3, %s2381_s14  ;;  %v1709_v12 = vcvt.s32.f32 %v2937_v0  ;;  %vm1790_vm14 = vcmask 31744   ;;  %v1725_v61 = vcvt.s32.f32 %v3511_v38  ;;  %v1708_v0 = vcvt.s32.f32 %v2945_v26  ;;  %v4098_v57 = vld [vmem:[#allocation18_spill] sm:$0xff]  ;;  %v4099_v40 = vld [vmem:[#allocation20_spill] sm:$0xff]  ;;  %v4101_v39 = vld [vmem:[#allocation19_spill] sm:$0xff] }
 0x601   : > { %v1734_v45 = vcvt.s32.f32 %v3515_v46  ;;  %v1717_v59 = vcvt.s32.f32 %v2957_v18  ;;  %v1728_v18 = vcvt.s32.f32 %v3536_v16  ;;  %v1711_v20 = vcvt.s32.f32 %v2985_v52  ;;  %v4100_v62 = vld [vmem:[#allocation32_spill] sm:$0xff]  ;;  %v4102_v22 = vld [vmem:[#allocation33_spill] sm:$0xff]  ;;  %v4105_v19 = vld [vmem:[#allocation22_spill] sm:$0xff] }
 0x602   : > { %v1733_v5 = vcvt.s32.f32 %v3541_v50  ;;  %v1716_v37 = vcvt.s32.f32 %v4100_v62  ;;  %v1736_v50 = vcvt.s32.f32 %v3554_v47  ;;  %v1719_v2 = vcvt.s32.f32 %v4102_v22  ;;  %v4103_v4 = vld [vmem:[#allocation21_spill] sm:$0xff]  ;;  %v4104_v47 = vld [vmem:[#allocation34_spill] sm:$0xff]  ;;  %v4106_v63 = vld [vmem:[#allocation35_spill] sm:$0xff] }
 0x603   : > { %v1727_v41 = vcvt.s32.f32 %v3566_v42  ;;  %v1710_v28 = vcvt.s32.f32 %v4104_v47  ;;  %v1730_v11 = vcvt.s32.f32 %v3578_v60 }
 0x638   : > { %v1372_v30 = vpop.xlane.xlu1 %1371 }
 0x639   : > { %v1743_v31 = vsel %vm1741_vm11, %v4096_v49, %v1372_v30 }
 0x63a   : > { %v1759_v9 = vsel %vm1724_vm12, %v1726_v36, %v1743_v31  ;;  %v1713_v36 = vcvt.s32.f32 %v4106_v63  ;;  %v1735_v31 = vcvt.s32.f32 %v3587_v32 }
 0x63b   : > { %v1775_v21 = vsel %vm1707_vm13, %v1709_v12, %v1759_v9  ;;  %v4107_v12 = vld [vmem:[#allocation23_spill] sm:$0xff] }
 0x63c   : > { %1792 = vst.msk [vmem:[%s3790_s13 + $0x8] sm:$0xff] %vm1790_vm14, %v1775_v21  ;;  %v1369_v1 = vpop.xlane.xlu0 %1368  ;;  %v4108_v21 = vld [vmem:[#allocation36_spill] sm:$0xff] }
 0x63d   : > { %v1396_v8 = vpop.xlane.xlu1 %1395  ;;  %v1742_v17 = vsel %vm1741_vm11, %v4097_v53, %v1369_v1  ;;  %v1738_v53 = vcvt.s32.f32 %v3611_v27 }
 0x63e   : > { %v1751_v6 = vsel %vm1741_vm11, %v4098_v57, %v1396_v8  ;;  %v1758_v38 = vsel %vm1724_vm12, %v1725_v61, %v1742_v17  ;;  %v1718_v61 = vcvt.s32.f32 %v4108_v21 }
 0x63f   : > { %v1767_v26 = vsel %vm1724_vm12, %v1734_v45, %v1751_v6  ;;  %v1774_v46 = vsel %vm1707_vm13, %v1708_v0, %v1758_v38  ;;  %v4109_v0 = vld [vmem:[#allocation24_spill] sm:$0xff]  ;;  %v4111_v6 = vld [vmem:[#allocation25_spill] sm:$0xff] }
 0x640   : > { %v1783_v33 = vsel %vm1707_vm13, %v1717_v59, %v1767_v26  ;;  %1791 = vst.msk [vmem:[%s3790_s13] sm:$0xff] %vm1790_vm14, %v1774_v46  ;;  %v4110_v59 = vld [vmem:[#allocation37_spill] sm:$0xff] }
 0x641   : > { %1800 = vst.msk [vmem:[%s3790_s13 + $0x48] sm:$0xff] %vm1790_vm14, %v1783_v33  ;;  %v1378_v10 = vpop.xlane.xlu1 %1377  ;;  %v1393_v43 = vpop.xlane.xlu0 %1392  ;;  %v1721_v57 = vcvt.s32.f32 %v4110_v59  ;;  %v1729_v33 = vcvt.s32.f32 %v3634_v56  ;;  %v4114_v56 = vld [vmem:[#allocation39_spill] sm:$0xff] }
 0x642   : > { %v1745_v24 = vsel %vm1741_vm11, %v4099_v40, %v1378_v10  ;;  %v1750_v29 = vsel %vm1741_vm11, %v4101_v39, %v1393_v43  ;;  %v4112_v10 = vld [vmem:[#allocation38_spill] sm:$0xff]  ;;  %v1715_v62 = vcvt.s32.f32 %v4114_v56  ;;  %v1737_v39 = vcvt.s32.f32 %v3645_v3 }
 0x643   : > { %v1761_v48 = vsel %vm1724_vm12, %v1728_v18, %v1745_v24  ;;  %v1766_v52 = vsel %vm1724_vm12, %v1733_v5, %v1750_v29  ;;  %v1712_v27 = vcvt.s32.f32 %v4112_v10 }
 0x644   : > { %v1777_v16 = vsel %vm1707_vm13, %v1711_v20, %v1761_v48  ;;  %v1782_v34 = vsel %vm1707_vm13, %v1716_v37, %v1766_v52  ;;  %v4113_v20 = vld [vmem:[#allocation26_spill] sm:$0xff]  ;;  %v1732_v48 = vcvt.s32.f32 %v3639_v54  ;;  %v4115_v37 = vld [vmem:[#allocation27_spill] sm:$0xff] }
 0x645   : > { %1794 = vst.msk [vmem:[%s3790_s13 + $0x18] sm:$0xff] %vm1790_vm14, %v1777_v16  ;;  %v1402_v55 = vpop.xlane.xlu1 %1401  ;;  %1799 = vst.msk [vmem:[%s3790_s13 + $0x40] sm:$0xff] %vm1790_vm14, %v1782_v34 }
 0x646   : > { %v1753_v58 = vsel %vm1741_vm11, %v4103_v4, %v1402_v55  ;;  %v1375_v51 = vpop.xlane.xlu0 %1374  ;;  %v4117_v55 = vld [vmem:[#allocation28_spill] sm:$0xff] }
 0x647   : > { %v1769_v35 = vsel %vm1724_vm12, %v1736_v50, %v1753_v58  ;;  %v1744_v13 = vsel %vm1741_vm11, %v4105_v19, %v1375_v51  ;;  %v4116_v50 = vld [vmem:[#allocation40_spill] sm:$0xff]  ;;  %v4118_v58 = vld [vmem:[#allocation41_spill] sm:$0xff]  ;;  %v4120_v19 = vld [vmem:[#allocation42_spill] sm:$0xff] }
 0x648   : > { %v1785_v25 = vsel %vm1707_vm13, %v1719_v2, %v1769_v35  ;;  %v1760_v42 = vsel %vm1724_vm12, %v1727_v41, %v1744_v13  ;;  %v1720_v34 = vcvt.s32.f32 %v4116_v50  ;;  %v1740_v2 = vcvt.s32.f32 %v3656_v15  ;;  %v4119_v51 = vld [vmem:[#allocation29_spill] sm:$0xff] }
 0x649   : > { %1802 = vst.msk [vmem:[%s3790_s13 + $0x58] sm:$0xff] %vm1790_vm14, %v1785_v25  ;;  %v1384_v23 = vpop.xlane.xlu1 %1383  ;;  %v1776_v30 = vsel %vm1707_vm13, %v1710_v28, %v1760_v42  ;;  %v1723_v41 = vcvt.s32.f32 %v4118_v58  ;;  %v1731_v28 = vcvt.s32.f32 %v3666_v14  ;;  %v1714_v13 = vcvt.s32.f32 %v4120_v19  ;;  %v4121_v42 = vld [vmem:[#allocation30_spill] sm:$0xff] }
 0x64a   : > { %v1747_v49 = vsel %vm1741_vm11, %v4107_v12, %v1384_v23  ;;  %1793 = vst.msk [vmem:[%s3790_s13 + $0x10] sm:$0xff] %vm1790_vm14, %v1776_v30  ;;  %v1399_v9 = vpop.xlane.xlu0 %1398  ;;  %v4122_v12 = vld [vmem:[#allocation43_spill] sm:$0xff] }
 0x64b   : > { %v1763_v60 = vsel %vm1724_vm12, %v1730_v11, %v1747_v49  ;;  %v1752_v45 = vsel %vm1741_vm11, %v4109_v0, %v1399_v9  ;;  %v1722_v49 = vcvt.s32.f32 %v4122_v12 }
 0x64c   : > { %v1779_v1 = vsel %vm1707_vm13, %v1713_v36, %v1763_v60  ;;  %v1768_v32 = vsel %vm1724_vm12, %v1735_v31, %v1752_v45  ;;  %v1739_v36 = vcvt.s32.f32 %v3683_v44  ;;  %v4123_v31 = vld [vmem:[#allocation31_spill] sm:$0xff] }
 0x64d   : > { %1796 = vst.msk [vmem:[%s3790_s13 + $0x28] sm:$0xff] %vm1790_vm14, %v1779_v1  ;;  %v1784_v8 = vsel %vm1707_vm13, %v1718_v61, %v1768_v32 }
 0x64e   : > { %1801 = vst.msk [vmem:[%s3790_s13 + $0x50] sm:$0xff] %vm1790_vm14, %v1784_v8 }
 0x64f   : > { %v1408_v17 = vpop.xlane.xlu1 %1407 }
 0x650   : > { %v1755_v38 = vsel %vm1741_vm11, %v4111_v6, %v1408_v17 }
 0x651   : > { %v1771_v26 = vsel %vm1724_vm12, %v1738_v53, %v1755_v38 }
 0x652   : > { %v1787_v46 = vsel %vm1707_vm13, %v1721_v57, %v1771_v26 }
 0x653   : > { %1804 = vst.msk [vmem:[%s3790_s13 + $0x68] sm:$0xff] %vm1790_vm14, %v1787_v46 }
 0x654   : > { %v1381_v18 = vpop.xlane.xlu0 %1380 }
 0x655   : > { %v1746_v40 = vsel %vm1741_vm11, %v4113_v20, %v1381_v18 }
 0x656   : > { %v1762_v24 = vsel %vm1724_vm12, %v1729_v33, %v1746_v40 }
 0x657   : > { %v1778_v5 = vsel %vm1707_vm13, %v1712_v27, %v1762_v24 }
 0x658   : > { %1795 = vst.msk [vmem:[%s3790_s13 + $0x20] sm:$0xff] %vm1790_vm14, %v1778_v5  ;;  %v1390_v43 = vpop.xlane.xlu1 %1389 }
 0x659   : > { %v1749_v16 = vsel %vm1741_vm11, %v4115_v37, %v1390_v43 }
 0x65a   : > { %v1765_v29 = vsel %vm1724_vm12, %v1732_v48, %v1749_v16  ;;  %v1405_v52 = vpop.xlane.xlu0 %1404 }
 0x65b   : > { %v1781_v54 = vsel %vm1707_vm13, %v1715_v62, %v1765_v29  ;;  %v1754_v22 = vsel %vm1741_vm11, %v4117_v55, %v1405_v52 }
 0x65c   : > { %1798 = vst.msk [vmem:[%s3790_s13 + $0x38] sm:$0xff] %vm1790_vm14, %v1781_v54  ;;  %v1770_v3 = vsel %vm1724_vm12, %v1737_v39, %v1754_v22  ;;  %v1414_v4 = vpop.xlane.xlu1 %1413 }
 0x65d   : > { %v1786_v35 = vsel %vm1707_vm13, %v1720_v34, %v1770_v3  ;;  %v1757_v47 = vsel %vm1741_vm11, %v4119_v51, %v1414_v4 }
 0x65e   : > { %1803 = vst.msk [vmem:[%s3790_s13 + $0x60] sm:$0xff] %vm1790_vm14, %v1786_v35  ;;  %v1773_v15 = vsel %vm1724_vm12, %v1740_v2, %v1757_v47  ;;  %v1387_v25 = vpop.xlane.xlu0 %1386 }
 0x65f   : > { %v1789_v11 = vsel %vm1707_vm13, %v1723_v41, %v1773_v15  ;;  %v1748_v23 = vsel %vm1741_vm11, %v4121_v42, %v1387_v25 }
 0x660   : > { %1806 = vst.msk [vmem:[%s3790_s13 + $0x78] sm:$0xff] %vm1790_vm14, %v1789_v11  ;;  %v1764_v14 = vsel %vm1724_vm12, %v1731_v28, %v1748_v23 }
 0x661   : > { %v1780_v63 = vsel %vm1707_vm13, %v1714_v13, %v1764_v14 }
 0x662   : > { %1797 = vst.msk [vmem:[%s3790_s13 + $0x30] sm:$0xff] %vm1790_vm14, %v1780_v63  ;;  %v1411_v30 = vpop.xlane.xlu0 %1410 }
 0x663   : > { %v1756_v60 = vsel %vm1741_vm11, %v4123_v31, %v1411_v30 }
 0x664   : > { %v1772_v9 = vsel %vm1724_vm12, %v1739_v36, %v1756_v60 }
 0x665   : > { %v1788_v21 = vsel %vm1707_vm13, %v1722_v49, %v1772_v9 }
 0x666   : > { %1805 = vst.msk [vmem:[%s3790_s13 + $0x70] sm:$0xff] %vm1790_vm14, %v1788_v21 }
 0x667 PF: > { %p2093_p5 = scmp.ge.s32.totalorder %s2285_s18, 2  ;;  %s1860_s25 = sand.u32 1, %s2273_s15  }
 0x668   : > { %s1861_s14 = scalar_lea.sflag [#allocation3], %s1860_s25 }
 0x669   : > { %p2090_p1 = pnand %p2093_p5, %p2356_p6 }
 0x66b   : > { %2268 = dma.done.wait (!%p2090_p1), %s1861_s14, 64  }
 0x66c   : > { %2270 = vsyncadd (!%p2090_p1), %s1861_s14, 4294967232  ;;  %p15_p2 = scmp.ge.s32.totalorder %s2339_s21, 4   ;;  %s4124_s15 = smov %s2277_s16 }
 0x66d   : > { %s4125_s16 = smov %s2281_s17  ;;  %s4126_s17 = smov %s2350_s24 }
 0x66e   : > { %s4127_s18 = smov %s2339_s21  ;;  %17 = sbr.rel (!%p15_p2) target bundleno = 3 (0x3), region = 82 }
 0x675   :  { %1866 = vsyncpa [#allocation3], 1 }
 0x676   :  { %1868 = vsyncpa [#allocation3 + $0x1], 1 }

</bundles_post_ra>
